<compile_context>
chip_gen: v6e
topology: v6e:2x2x1
jax: 0.10.0
libtpu: 0.0.40
codegen_flags: <defaults>
</compile_context>

<pallas_src>
import functools
import math

import jax
import jax.numpy as jnp
from jax import lax
from jax.experimental import pallas as pl
from jax.experimental.pallas import tpu as pltpu

LANE = 128


# ----------------------------------------------------------------------------
# Fused kernel body: one (image-block, layer) grid step per invocation.
# ----------------------------------------------------------------------------
def vit_kernel(x_ref, pe_ref, embw_ref, embb_ref,
               wq_ref, bq_ref, wk_ref, bk_ref, wv_ref, bv_ref,
               wo_ref, bo_ref, ln1w_ref, ln1b_ref,
               w1_ref, b1_ref, w2_ref, b2_ref, ln2w_ref, ln2b_ref,
               fcw_ref, fcb_ref, out_ref, act_ref,
               *, num_heads, block_n, num_patches):
    l = pl.program_id(1)
    P = num_patches
    D = act_ref.shape[-1]
    Dh = D // num_heads
    scale = 1.0 / math.sqrt(Dh)
    mm_dtype = wq_ref.dtype                       # bf16 MXU inputs, f32 accumulation

    def mm(a, w_ref, b_ref=None):
        r = jnp.dot(a.astype(w_ref.dtype), w_ref[...],
                    preferred_element_type=jnp.float32)
        if b_ref is not None:
            r = r + b_ref[...]
        return r

    def layer_norm(y, w, b):                      # eps=1e-5, biased variance (torch)
        mu = jnp.mean(y, axis=-1, keepdims=True)
        var = jnp.mean((y - mu) ** 2, axis=-1, keepdims=True)
        return (y - mu) * lax.rsqrt(var + 1e-5) * w + b

    # --- layer 0: patch embedding + positional encoding into the VMEM scratch ---
    @pl.when(l == 0)
    def _():
        emb = mm(x_ref[...], embw_ref, embb_ref)  # (block_n*P, D), f32
        pe = pe_ref[...]                          # (P, D) broadcast in-kernel
        if block_n > 1:
            pe = jnp.tile(pe, (block_n, 1))
        act_ref[...] = emb + pe

    x = act_ref[...]                              # (block_n*P, D) f32

    # --- multi-head self-attention: per-image (P, P) scores, no cross-image work ---
    q = mm(x, wq_ref, bq_ref)
    k = mm(x, wk_ref, bk_ref)
    v = mm(x, wv_ref, bv_ref)

    img_outs = []
    for img in range(block_n):
        r0 = img * P
        head_outs = []
        for h in range(num_heads):
            c0 = h * Dh
            qh = q[r0:r0 + P, c0:c0 + Dh].astype(mm_dtype)
            kh = k[r0:r0 + P, c0:c0 + Dh].astype(mm_dtype)
            vh = v[r0:r0 + P, c0:c0 + Dh].astype(mm_dtype)
            # q @ k^T without materializing k.T (contract last dims on the MXU)
            s = lax.dot_general(qh, kh, (((1,), (1,)), ((), ())),
                                preferred_element_type=jnp.float32) * scale
            s = s - jnp.max(s, axis=-1, keepdims=True)
            p = jnp.exp(s)
            p = p * pl.reciprocal(jnp.sum(p, axis=-1, keepdims=True), approx=True)
            head_outs.append(jnp.dot(p.astype(mm_dtype), vh,
                                     preferred_element_type=jnp.float32))
        img_outs.append(jnp.concatenate(head_outs, axis=-1))       # (P, D)
    attn = img_outs[0] if block_n == 1 else jnp.concatenate(img_outs, axis=0)

    attn = mm(attn, wo_ref, bo_ref)
    y = layer_norm(x + attn, ln1w_ref[...], ln1b_ref[...])          # residual + LN

    # --- feed-forward: Linear -> ReLU -> Linear, residual + LN --------------------
    h1 = jnp.maximum(mm(y, w1_ref, b1_ref), 0.0)
    h2 = mm(h1, w2_ref, b2_ref)
    x_out = layer_norm(y + h2, ln2w_ref[...], ln2b_ref[...])
    act_ref[...] = x_out                          # carry activation to next layer

    # --- last layer: classifier on the CLS row (token 0) of each image only -------
    @pl.when(l == pl.num_programs(1) - 1)
    def _():
        if block_n == 1:
            cls = x_out[0:1, :]                                    # (1, D)
        else:
            cls = jnp.concatenate([x_out[i * P:i * P + 1, :]
                                   for i in range(block_n)], axis=0)
        out_ref[...] = (jnp.dot(cls, fcw_ref[...],
                                preferred_element_type=jnp.float32) + fcb_ref[...])


# ----------------------------------------------------------------------------
# Glue: patchify, positional encoding table, parameter init, full forward
# ----------------------------------------------------------------------------
def patchify(images, patch_dim):
    # Matches torch: unfold(2,p,p).unfold(3,p,p) -> (N,C,Hn,Wn,p,p); the
    # .permute(...) in the reference is NOT assigned, so it is skipped.
    N, C, H, W = images.shape
    Hn, Wn = H // patch_dim, W // patch_dim
    p = images.reshape(N, C, Hn, patch_dim, Wn, patch_dim)
    p = p.transpose(0, 1, 2, 4, 3, 5)             # (N, C, Hn, Wn, p, p)
    return p.reshape(N, -1, patch_dim * patch_dim * C)


def sinusoidal_pe(seq_len, d_model):
    pos = jnp.arange(seq_len, dtype=jnp.float32)[:, None]
    i = jnp.arange(0, d_model, 2, dtype=jnp.float32)
    div = jnp.power(10000.0, -i / d_model)
    pe = jnp.zeros((seq_len, d_model), dtype=jnp.float32)
    pe = pe.at[:, 0::2].set(jnp.sin(pos * div))
    pe = pe.at[:, 1::2].set(jnp.cos(pos * div))
    return pe


def init_linear(key, in_dim, out_dim):
    # torch nn.Linear weight is (out,in) with normal(0,0.02), bias zero.
    w = jax.random.normal(key, (out_dim, in_dim), dtype=jnp.float32) * 0.02
    return w.T, jnp.zeros((1, out_dim), dtype=jnp.float32)


def init_params(key, patch_dim, d_model, d_ff, num_heads, num_layers, num_classes):
    keys = jax.random.split(key, 2 + 6 * num_layers)
    params = {}
    params["emb_w"], params["emb_b"] = init_linear(keys[0], patch_dim * patch_dim * 3, d_model)
    params["fc_w"], params["fc_b"] = init_linear(keys[1], d_model, num_classes)

    names = ["wq", "bq", "wk", "bk", "wv", "bv", "wo", "bo",
             "w1", "b1", "w2", "b2", "ln1w", "ln1b", "ln2w", "ln2b"]
    per_layer = {n: [] for n in names}
    for l in range(num_layers):
        k = keys[2 + 6 * l: 2 + 6 * (l + 1)]
        wq, bq = init_linear(k[0], d_model, d_model)
        wk, bk = init_linear(k[1], d_model, d_model)
        wv, bv = init_linear(k[2], d_model, d_model)
        wo, bo = init_linear(k[3], d_model, d_model)
        w1, b1 = init_linear(k[4], d_model, d_ff)
        w2, b2 = init_linear(k[5], d_ff, d_model)
        vals = dict(wq=wq, bq=bq, wk=wk, bk=bk, wv=wv, bv=bv, wo=wo, bo=bo,
                    w1=w1, b1=b1, w2=w2, b2=b2,
                    ln1w=jnp.ones((1, d_model), jnp.float32),
                    ln1b=jnp.zeros((1, d_model), jnp.float32),
                    ln2w=jnp.ones((1, d_model), jnp.float32),
                    ln2b=jnp.zeros((1, d_model), jnp.float32))
        for n in names:
            per_layer[n].append(vals[n])
    # stack per-layer weights along a leading L axis (streamed per grid step)
    params["layers"] = {n: jnp.stack(v, axis=0) for n, v in per_layer.items()}
    return params


def vit_forward(images, params, *, patch_dim, num_heads, block_n=1,
                matmul_dtype=jnp.bfloat16):
    N = images.shape[0]
    patches = patchify(images, patch_dim)          # (N, P, p*p*3)
    _, P, Dp = patches.shape
    d_model = params["emb_w"].shape[1]
    num_classes = params["fc_w"].shape[1]
    assert N % block_n == 0
    NB = N // block_n                              # image blocks ("parallel" grid axis)

    x3d = patches.reshape(NB, block_n * P, Dp)
    pe = sinusoidal_pe(P, d_model)                 # (P, D); broadcast happens in-kernel

    # lane-dense padded classifier (real classes sliced outside the kernel)
    c_pad = max(LANE, ((num_classes + LANE - 1) // LANE) * LANE)
    fcw_pad = jnp.zeros((d_model, c_pad), jnp.float32).at[:, :num_classes].set(params["fc_w"])
    fcb_pad = jnp.zeros((1, c_pad), jnp.float32).at[:, :num_classes].set(params["fc_b"])

    sp = params["layers"]
    num_layers = sp["wq"].shape[0]

    # bf16 operands for the big matmuls; biases / LN params / classifier stay f32.
    emb_w = params["emb_w"].astype(matmul_dtype)
    wq, wk, wv, wo = (sp[n].astype(matmul_dtype) for n in ("wq", "wk", "wv", "wo"))
    w1, w2 = sp["w1"].astype(matmul_dtype), sp["w2"].astype(matmul_dtype)

    layer_args = (wq, sp["bq"], wk, sp["bk"], wv, sp["bv"], wo, sp["bo"],
                  sp["ln1w"], sp["ln1b"], w1, sp["b1"], w2, sp["b2"],
                  sp["ln2w"], sp["ln2b"])
    const_args = (fcw_pad, fcb_pad)
    args = (x3d, pe, emb_w, params["emb_b"]) + layer_args + const_args

    # ---- BlockSpecs -----------------------------------------------------------
    def const_spec(a):                             # fetched once (constant block idx)
        nd = a.ndim
        return pl.BlockSpec(a.shape, lambda i, l, nd=nd: (0,) * nd)

    def layer_spec(a):                             # stream layer l's slice per step
        nd = a.ndim
        return pl.BlockSpec((None,) + a.shape[1:],
                            lambda i, l, nd=nd: (l,) + (0,) * (nd - 1))

    x_spec = pl.BlockSpec((None, block_n * P, Dp), lambda i, l: (i, 0, 0))
    in_specs = ([x_spec, const_spec(pe), const_spec(emb_w), const_spec(params["emb_b"])]
                + [layer_spec(a) for a in layer_args]
                + [const_spec(a) for a in const_args])

    out_spec = pl.BlockSpec((None, block_n, c_pad), lambda i, l: (i, 0, 0))
    out_shape = jax.ShapeDtypeStruct((NB, block_n, c_pad), jnp.float32)

    # ---- VMEM budget: constants + 2x one layer of streamed weights + scratch ---
    def nbytes(a):
        return a.size * a.dtype.itemsize
    const_bytes = sum(nbytes(a) for a in (pe, emb_w, params["emb_b"], fcw_pad, fcb_pad))
    block_in_bytes = 2 * (block_n * P * Dp * 4)                   # patches (dbl-buffered)
    layer_bytes = 2 * sum(nbytes(a) // num_layers for a in layer_args)
    scratch_bytes = block_n * P * d_model * 4
    out_bytes = 2 * block_n * c_pad * 4
    est = 2 * (const_bytes + block_in_bytes + layer_bytes + scratch_bytes + out_bytes)
    vmem_limit = int(min(max(est + (1 << 20), 16 * 2**20), 100 * 2**20))

    kernel = functools.partial(vit_kernel, num_heads=num_heads,
                               block_n=block_n, num_patches=P)
    out = pl.pallas_call(
        kernel,
        grid=(NB, num_layers),                      # (image-block: parallel, layer: arbitrary)
        in_specs=in_specs,
        out_specs=out_spec,
        out_shape=out_shape,
        scratch_shapes=[pltpu.VMEM((block_n * P, d_model), jnp.float32)],
        compiler_params=pltpu.CompilerParams(
            dimension_semantics=("parallel", "arbitrary"),
            vmem_limit_bytes=vmem_limit),
    )(*args)

    # CLS token is the first token of each image (reference quirk); slice real classes.
    return out.reshape(N, c_pad)[:, :num_classes]


# ----------------------------------------------------------------------------
if __name__ == "__main__":
    # Small, consistent shapes: 16x16 RGB images, 8x8 patches -> 4 patches/image.
    N, C, H, W = 2, 3, 16, 16
    patch_dim = 8
    d_model, d_ff, num_heads, num_layers, num_classes = 32, 64, 4, 2, 10

    key = jax.random.PRNGKey(0)
    k_img, k_par = jax.random.split(key)
    images = jax.random.normal(k_img, (N, C, H, W), dtype=jnp.float32)
    params = init_params(k_par, patch_dim, d_model, d_ff, num_heads, num_layers, num_classes)

    logits = vit_forward(images, params, patch_dim=patch_dim, num_heads=num_heads)
    logits = jax.block_until_ready(logits)
    assert logits.shape == (N, num_classes) and logits.dtype == jnp.float32
    assert bool(jnp.all(jnp.isfinite(logits)))
    print("KERNEL_OK")
</pallas_src>

<mosaic_0001>
module attributes {stable_mosaic.version = 11 : i64} {
  func.func @vit_kernel(%arg0: i32, %arg1: i32, %arg2: memref<1x4x192xf32, #tpu.memory_space<vmem>>, %arg3: memref<4x32xf32, #tpu.memory_space<vmem>>, %arg4: memref<192x32xbf16, #tpu.memory_space<vmem>>, %arg5: memref<1x32xf32, #tpu.memory_space<vmem>>, %arg6: memref<1x32x32xbf16, #tpu.memory_space<vmem>>, %arg7: memref<1x1x32xf32, #tpu.memory_space<vmem>>, %arg8: memref<1x32x32xbf16, #tpu.memory_space<vmem>>, %arg9: memref<1x1x32xf32, #tpu.memory_space<vmem>>, %arg10: memref<1x32x32xbf16, #tpu.memory_space<vmem>>, %arg11: memref<1x1x32xf32, #tpu.memory_space<vmem>>, %arg12: memref<1x32x32xbf16, #tpu.memory_space<vmem>>, %arg13: memref<1x1x32xf32, #tpu.memory_space<vmem>>, %arg14: memref<1x1x32xf32, #tpu.memory_space<vmem>>, %arg15: memref<1x1x32xf32, #tpu.memory_space<vmem>>, %arg16: memref<1x32x64xbf16, #tpu.memory_space<vmem>>, %arg17: memref<1x1x64xf32, #tpu.memory_space<vmem>>, %arg18: memref<1x64x32xbf16, #tpu.memory_space<vmem>>, %arg19: memref<1x1x32xf32, #tpu.memory_space<vmem>>, %arg20: memref<1x1x32xf32, #tpu.memory_space<vmem>>, %arg21: memref<1x1x32xf32, #tpu.memory_space<vmem>>, %arg22: memref<32x128xf32, #tpu.memory_space<vmem>>, %arg23: memref<1x128xf32, #tpu.memory_space<vmem>>, %arg24: memref<1x1x128xf32, #tpu.memory_space<vmem>>, %arg25: memref<4x32xf32, #tpu.memory_space<vmem>>) attributes {dimension_semantics = [#tpu.dimension_semantics<parallel>, #tpu.dimension_semantics<arbitrary>], iteration_bounds = array<i64: 2, 2>, scalar_prefetch = 0 : i64, scratch_operands = 1 : i64, tpu.core_type = #tpu.core_type<tc>, window_params = [{transform_indices = @transform_0, window_bounds = array<i64: 1, 4, 192>}, {pipeline_mode = #tpu.pipeline_mode<synchronous>, transform_indices = @transform_1, window_bounds = array<i64: 4, 32>}, {pipeline_mode = #tpu.pipeline_mode<synchronous>, transform_indices = @transform_2, window_bounds = array<i64: 192, 32>}, {pipeline_mode = #tpu.pipeline_mode<synchronous>, transform_indices = @transform_3, window_bounds = array<i64: 1, 32>}, {transform_indices = @transform_4, window_bounds = array<i64: 1, 32, 32>}, {transform_indices = @transform_5, window_bounds = array<i64: 1, 1, 32>}, {transform_indices = @transform_6, window_bounds = array<i64: 1, 32, 32>}, {transform_indices = @transform_7, window_bounds = array<i64: 1, 1, 32>}, {transform_indices = @transform_8, window_bounds = array<i64: 1, 32, 32>}, {transform_indices = @transform_9, window_bounds = array<i64: 1, 1, 32>}, {transform_indices = @transform_10, window_bounds = array<i64: 1, 32, 32>}, {transform_indices = @transform_11, window_bounds = array<i64: 1, 1, 32>}, {transform_indices = @transform_12, window_bounds = array<i64: 1, 1, 32>}, {transform_indices = @transform_13, window_bounds = array<i64: 1, 1, 32>}, {transform_indices = @transform_14, window_bounds = array<i64: 1, 32, 64>}, {transform_indices = @transform_15, window_bounds = array<i64: 1, 1, 64>}, {transform_indices = @transform_16, window_bounds = array<i64: 1, 64, 32>}, {transform_indices = @transform_17, window_bounds = array<i64: 1, 1, 32>}, {transform_indices = @transform_18, window_bounds = array<i64: 1, 1, 32>}, {transform_indices = @transform_19, window_bounds = array<i64: 1, 1, 32>}, {pipeline_mode = #tpu.pipeline_mode<synchronous>, transform_indices = @transform_20, window_bounds = array<i64: 32, 128>}, {pipeline_mode = #tpu.pipeline_mode<synchronous>, transform_indices = @transform_21, window_bounds = array<i64: 1, 128>}, {transform_indices = @transform_22, window_bounds = array<i64: 1, 1, 128>}]} {
    %c0_i32 = arith.constant 0 : i32
    %0 = arith.cmpi eq, %arg1, %c0_i32 : i32
    %1 = arith.extui %0 : i1 to i32
    %c0_i32_0 = arith.constant 0 : i32
    %2 = arith.cmpi ne, %1, %c0_i32_0 : i32
    scf.if %2 {
      %c0_89 = arith.constant 0 : index
      %c0_90 = arith.constant 0 : index
      %c0_91 = arith.constant 0 : index
      %197 = vector.load %arg2[%c0_89, %c0_90, %c0_91] : memref<1x4x192xf32, #tpu.memory_space<vmem>>, vector<1x4x192xf32>
      %198 = vector.shape_cast %197 : vector<1x4x192xf32> to vector<4x192xf32>
      %199 = arith.truncf %198 : vector<4x192xf32> to vector<4x192xbf16>
      %c0_92 = arith.constant 0 : index
      %c0_93 = arith.constant 0 : index
      %200 = vector.load %arg4[%c0_92, %c0_93] : memref<192x32xbf16, #tpu.memory_space<vmem>>, vector<192x32xbf16>
      %cst_94 = arith.constant dense<0.000000e+00> : vector<4x32xf32>
      %201 = tpu.matmul %199, %200, %cst_94 {dimension_numbers = #tpu.dot_dimension_numbers<[1], [0], [0], [1], [0, 0, 1, 1], [], []>} : vector<4x192xbf16>, vector<192x32xbf16>, vector<4x32xf32> -> vector<4x32xf32>
      %c0_95 = arith.constant 0 : index
      %c0_96 = arith.constant 0 : index
      %202 = vector.load %arg5[%c0_95, %c0_96] : memref<1x32xf32, #tpu.memory_space<vmem>>, vector<1x32xf32>
      %203 = vector.broadcast %202 : vector<1x32xf32> to vector<4x32xf32>
      %204 = arith.addf %201, %203 : vector<4x32xf32>
      %c0_97 = arith.constant 0 : index
      %c0_98 = arith.constant 0 : index
      %205 = vector.load %arg3[%c0_97, %c0_98] : memref<4x32xf32, #tpu.memory_space<vmem>>, vector<4x32xf32>
      %206 = arith.addf %204, %205 : vector<4x32xf32>
      %c0_99 = arith.constant 0 : index
      %c0_100 = arith.constant 0 : index
      %207 = vector.load %arg25[%c0_99, %c0_100] : memref<4x32xf32, #tpu.memory_space<vmem>>, vector<4x32xf32>
      tpu.vector_store %arg25[%c0_99, %c0_100], %206 {strides = array<i32>} : memref<4x32xf32, #tpu.memory_space<vmem>>, vector<4x32xf32>,
    } else {
    }
    %c0 = arith.constant 0 : index
    %c0_1 = arith.constant 0 : index
    %3 = vector.load %arg25[%c0, %c0_1] : memref<4x32xf32, #tpu.memory_space<vmem>>, vector<4x32xf32>
    %4 = arith.truncf %3 : vector<4x32xf32> to vector<4x32xbf16>
    %c0_2 = arith.constant 0 : index
    %c0_3 = arith.constant 0 : index
    %c0_4 = arith.constant 0 : index
    %5 = vector.load %arg6[%c0_2, %c0_3, %c0_4] : memref<1x32x32xbf16, #tpu.memory_space<vmem>>, vector<1x32x32xbf16>
    %6 = vector.shape_cast %5 : vector<1x32x32xbf16> to vector<32x32xbf16>
    %cst = arith.constant dense<0.000000e+00> : vector<4x32xf32>
    %7 = tpu.matmul %4, %6, %cst {dimension_numbers = #tpu.dot_dimension_numbers<[1], [0], [0], [1], [0, 0, 1, 1], [], []>} : vector<4x32xbf16>, vector<32x32xbf16>, vector<4x32xf32> -> vector<4x32xf32>
    %c0_5 = arith.constant 0 : index
    %c0_6 = arith.constant 0 : index
    %c0_7 = arith.constant 0 : index
    %8 = vector.load %arg7[%c0_5, %c0_6, %c0_7] : memref<1x1x32xf32, #tpu.memory_space<vmem>>, vector<1x1x32xf32>
    %9 = vector.shape_cast %8 : vector<1x1x32xf32> to vector<1x32xf32>
    %10 = vector.broadcast %9 : vector<1x32xf32> to vector<4x32xf32>
    %11 = arith.addf %7, %10 : vector<4x32xf32>
    %12 = arith.truncf %3 : vector<4x32xf32> to vector<4x32xbf16>
    %c0_8 = arith.constant 0 : index
    %c0_9 = arith.constant 0 : index
    %c0_10 = arith.constant 0 : index
    %13 = vector.load %arg8[%c0_8, %c0_9, %c0_10] : memref<1x32x32xbf16, #tpu.memory_space<vmem>>, vector<1x32x32xbf16>
    %14 = vector.shape_cast %13 : vector<1x32x32xbf16> to vector<32x32xbf16>
    %cst_11 = arith.constant dense<0.000000e+00> : vector<4x32xf32>
    %15 = tpu.matmul %12, %14, %cst_11 {dimension_numbers = #tpu.dot_dimension_numbers<[1], [0], [0], [1], [0, 0, 1, 1], [], []>} : vector<4x32xbf16>, vector<32x32xbf16>, vector<4x32xf32> -> vector<4x32xf32>
    %c0_12 = arith.constant 0 : index
    %c0_13 = arith.constant 0 : index
    %c0_14 = arith.constant 0 : index
    %16 = vector.load %arg9[%c0_12, %c0_13, %c0_14] : memref<1x1x32xf32, #tpu.memory_space<vmem>>, vector<1x1x32xf32>
    %17 = vector.shape_cast %16 : vector<1x1x32xf32> to vector<1x32xf32>
    %18 = vector.broadcast %17 : vector<1x32xf32> to vector<4x32xf32>
    %19 = arith.addf %15, %18 : vector<4x32xf32>
    %20 = arith.truncf %3 : vector<4x32xf32> to vector<4x32xbf16>
    %c0_15 = arith.constant 0 : index
    %c0_16 = arith.constant 0 : index
    %c0_17 = arith.constant 0 : index
    %21 = vector.load %arg10[%c0_15, %c0_16, %c0_17] : memref<1x32x32xbf16, #tpu.memory_space<vmem>>, vector<1x32x32xbf16>
    %22 = vector.shape_cast %21 : vector<1x32x32xbf16> to vector<32x32xbf16>
    %cst_18 = arith.constant dense<0.000000e+00> : vector<4x32xf32>
    %23 = tpu.matmul %20, %22, %cst_18 {dimension_numbers = #tpu.dot_dimension_numbers<[1], [0], [0], [1], [0, 0, 1, 1], [], []>} : vector<4x32xbf16>, vector<32x32xbf16>, vector<4x32xf32> -> vector<4x32xf32>
    %c0_19 = arith.constant 0 : index
    %c0_20 = arith.constant 0 : index
    %c0_21 = arith.constant 0 : index
    %24 = vector.load %arg11[%c0_19, %c0_20, %c0_21] : memref<1x1x32xf32, #tpu.memory_space<vmem>>, vector<1x1x32xf32>
    %25 = vector.shape_cast %24 : vector<1x1x32xf32> to vector<1x32xf32>
    %26 = vector.broadcast %25 : vector<1x32xf32> to vector<4x32xf32>
    %27 = arith.addf %23, %26 : vector<4x32xf32>
    %28 = vector.extract_strided_slice %11 {offsets = [0, 0], sizes = [4, 8], strides = [1, 1]} : vector<4x32xf32> to vector<4x8xf32>
    %29 = arith.truncf %28 : vector<4x8xf32> to vector<4x8xbf16>
    %30 = vector.extract_strided_slice %19 {offsets = [0, 0], sizes = [4, 8], strides = [1, 1]} : vector<4x32xf32> to vector<4x8xf32>
    %31 = arith.truncf %30 : vector<4x8xf32> to vector<4x8xbf16>
    %32 = vector.extract_strided_slice %27 {offsets = [0, 0], sizes = [4, 8], strides = [1, 1]} : vector<4x32xf32> to vector<4x8xf32>
    %33 = arith.truncf %32 : vector<4x8xf32> to vector<4x8xbf16>
    %cst_22 = arith.constant dense<0.000000e+00> : vector<4x4xf32>
    %34 = tpu.matmul %29, %31, %cst_22 {dimension_numbers = #tpu.dot_dimension_numbers<[1], [1], [0], [0], [0, 0, 1, 0], [], []>} : vector<4x8xbf16>, vector<4x8xbf16>, vector<4x4xf32> -> vector<4x4xf32>
    %cst_23 = arith.constant 0.353553385 : f32
    %35 = vector.broadcast %cst_23 : f32 to vector<4x4xf32>
    %36 = arith.mulf %34, %35 : vector<4x4xf32>
    %cst_24 = arith.constant dense<0xFF800000> : vector<4xf32>
    %37 = vector.multi_reduction <maximumf>, %36, %cst_24 [1] : vector<4x4xf32> to vector<4xf32>
    %38 = vector.shape_cast %37 : vector<4xf32> to vector<4x1xf32>
    %39 = vector.broadcast %38 : vector<4x1xf32> to vector<4x4xf32>
    %40 = arith.subf %36, %39 : vector<4x4xf32>
    %41 = math.exp %40 : vector<4x4xf32>
    %cst_25 = arith.constant dense<0.000000e+00> : vector<4xf32>
    %42 = vector.multi_reduction <add>, %41, %cst_25 [1] : vector<4x4xf32> to vector<4xf32>
    %43 = vector.shape_cast %42 : vector<4xf32> to vector<4x1xf32>
    %44 = tpu.reciprocal %43 {approx = true} : vector<4x1xf32> -> vector<4x1xf32>
    %45 = vector.broadcast %44 : vector<4x1xf32> to vector<4x4xf32>
    %46 = arith.mulf %41, %45 : vector<4x4xf32>
    %47 = arith.truncf %46 : vector<4x4xf32> to vector<4x4xbf16>
    %cst_26 = arith.constant dense<0.000000e+00> : vector<4x8xf32>
    %48 = tpu.matmul %47, %33, %cst_26 {dimension_numbers = #tpu.dot_dimension_numbers<[1], [0], [0], [1], [0, 0, 1, 1], [], []>} : vector<4x4xbf16>, vector<4x8xbf16>, vector<4x8xf32> -> vector<4x8xf32>
    %49 = vector.extract_strided_slice %11 {offsets = [0, 8], sizes = [4, 8], strides = [1, 1]} : vector<4x32xf32> to vector<4x8xf32>
    %50 = arith.truncf %49 : vector<4x8xf32> to vector<4x8xbf16>
    %51 = vector.extract_strided_slice %19 {offsets = [0, 8], sizes = [4, 8], strides = [1, 1]} : vector<4x32xf32> to vector<4x8xf32>
    %52 = arith.truncf %51 : vector<4x8xf32> to vector<4x8xbf16>
    %53 = vector.extract_strided_slice %27 {offsets = [0, 8], sizes = [4, 8], strides = [1, 1]} : vector<4x32xf32> to vector<4x8xf32>
    %54 = arith.truncf %53 : vector<4x8xf32> to vector<4x8xbf16>
    %cst_27 = arith.constant dense<0.000000e+00> : vector<4x4xf32>
    %55 = tpu.matmul %50, %52, %cst_27 {dimension_numbers = #tpu.dot_dimension_numbers<[1], [1], [0], [0], [0, 0, 1, 0], [], []>} : vector<4x8xbf16>, vector<4x8xbf16>, vector<4x4xf32> -> vector<4x4xf32>
    %cst_28 = arith.constant 0.353553385 : f32
    %56 = vector.broadcast %cst_28 : f32 to vector<4x4xf32>
    %57 = arith.mulf %55, %56 : vector<4x4xf32>
    %cst_29 = arith.constant dense<0xFF800000> : vector<4xf32>
    %58 = vector.multi_reduction <maximumf>, %57, %cst_29 [1] : vector<4x4xf32> to vector<4xf32>
    %59 = vector.shape_cast %58 : vector<4xf32> to vector<4x1xf32>
    %60 = vector.broadcast %59 : vector<4x1xf32> to vector<4x4xf32>
    %61 = arith.subf %57, %60 : vector<4x4xf32>
    %62 = math.exp %61 : vector<4x4xf32>
    %cst_30 = arith.constant dense<0.000000e+00> : vector<4xf32>
    %63 = vector.multi_reduction <add>, %62, %cst_30 [1] : vector<4x4xf32> to vector<4xf32>
    %64 = vector.shape_cast %63 : vector<4xf32> to vector<4x1xf32>
    %65 = tpu.reciprocal %64 {approx = true} : vector<4x1xf32> -> vector<4x1xf32>
    %66 = vector.broadcast %65 : vector<4x1xf32> to vector<4x4xf32>
    %67 = arith.mulf %62, %66 : vector<4x4xf32>
    %68 = arith.truncf %67 : vector<4x4xf32> to vector<4x4xbf16>
    %cst_31 = arith.constant dense<0.000000e+00> : vector<4x8xf32>
    %69 = tpu.matmul %68, %54, %cst_31 {dimension_numbers = #tpu.dot_dimension_numbers<[1], [0], [0], [1], [0, 0, 1, 1], [], []>} : vector<4x4xbf16>, vector<4x8xbf16>, vector<4x8xf32> -> vector<4x8xf32>
    %70 = vector.extract_strided_slice %11 {offsets = [0, 16], sizes = [4, 8], strides = [1, 1]} : vector<4x32xf32> to vector<4x8xf32>
    %71 = arith.truncf %70 : vector<4x8xf32> to vector<4x8xbf16>
    %72 = vector.extract_strided_slice %19 {offsets = [0, 16], sizes = [4, 8], strides = [1, 1]} : vector<4x32xf32> to vector<4x8xf32>
    %73 = arith.truncf %72 : vector<4x8xf32> to vector<4x8xbf16>
    %74 = vector.extract_strided_slice %27 {offsets = [0, 16], sizes = [4, 8], strides = [1, 1]} : vector<4x32xf32> to vector<4x8xf32>
    %75 = arith.truncf %74 : vector<4x8xf32> to vector<4x8xbf16>
    %cst_32 = arith.constant dense<0.000000e+00> : vector<4x4xf32>
    %76 = tpu.matmul %71, %73, %cst_32 {dimension_numbers = #tpu.dot_dimension_numbers<[1], [1], [0], [0], [0, 0, 1, 0], [], []>} : vector<4x8xbf16>, vector<4x8xbf16>, vector<4x4xf32> -> vector<4x4xf32>
    %cst_33 = arith.constant 0.353553385 : f32
    %77 = vector.broadcast %cst_33 : f32 to vector<4x4xf32>
    %78 = arith.mulf %76, %77 : vector<4x4xf32>
    %cst_34 = arith.constant dense<0xFF800000> : vector<4xf32>
    %79 = vector.multi_reduction <maximumf>, %78, %cst_34 [1] : vector<4x4xf32> to vector<4xf32>
    %80 = vector.shape_cast %79 : vector<4xf32> to vector<4x1xf32>
    %81 = vector.broadcast %80 : vector<4x1xf32> to vector<4x4xf32>
    %82 = arith.subf %78, %81 : vector<4x4xf32>
    %83 = math.exp %82 : vector<4x4xf32>
    %cst_35 = arith.constant dense<0.000000e+00> : vector<4xf32>
    %84 = vector.multi_reduction <add>, %83, %cst_35 [1] : vector<4x4xf32> to vector<4xf32>
    %85 = vector.shape_cast %84 : vector<4xf32> to vector<4x1xf32>
    %86 = tpu.reciprocal %85 {approx = true} : vector<4x1xf32> -> vector<4x1xf32>
    %87 = vector.broadcast %86 : vector<4x1xf32> to vector<4x4xf32>
    %88 = arith.mulf %83, %87 : vector<4x4xf32>
    %89 = arith.truncf %88 : vector<4x4xf32> to vector<4x4xbf16>
    %cst_36 = arith.constant dense<0.000000e+00> : vector<4x8xf32>
    %90 = tpu.matmul %89, %75, %cst_36 {dimension_numbers = #tpu.dot_dimension_numbers<[1], [0], [0], [1], [0, 0, 1, 1], [], []>} : vector<4x4xbf16>, vector<4x8xbf16>, vector<4x8xf32> -> vector<4x8xf32>
    %91 = vector.extract_strided_slice %11 {offsets = [0, 24], sizes = [4, 8], strides = [1, 1]} : vector<4x32xf32> to vector<4x8xf32>
    %92 = arith.truncf %91 : vector<4x8xf32> to vector<4x8xbf16>
    %93 = vector.extract_strided_slice %19 {offsets = [0, 24], sizes = [4, 8], strides = [1, 1]} : vector<4x32xf32> to vector<4x8xf32>
    %94 = arith.truncf %93 : vector<4x8xf32> to vector<4x8xbf16>
    %95 = vector.extract_strided_slice %27 {offsets = [0, 24], sizes = [4, 8], strides = [1, 1]} : vector<4x32xf32> to vector<4x8xf32>
    %96 = arith.truncf %95 : vector<4x8xf32> to vector<4x8xbf16>
    %cst_37 = arith.constant dense<0.000000e+00> : vector<4x4xf32>
    %97 = tpu.matmul %92, %94, %cst_37 {dimension_numbers = #tpu.dot_dimension_numbers<[1], [1], [0], [0], [0, 0, 1, 0], [], []>} : vector<4x8xbf16>, vector<4x8xbf16>, vector<4x4xf32> -> vector<4x4xf32>
    %cst_38 = arith.constant 0.353553385 : f32
    %98 = vector.broadcast %cst_38 : f32 to vector<4x4xf32>
    %99 = arith.mulf %97, %98 : vector<4x4xf32>
    %cst_39 = arith.constant dense<0xFF800000> : vector<4xf32>
    %100 = vector.multi_reduction <maximumf>, %99, %cst_39 [1] : vector<4x4xf32> to vector<4xf32>
    %101 = vector.shape_cast %100 : vector<4xf32> to vector<4x1xf32>
    %102 = vector.broadcast %101 : vector<4x1xf32> to vector<4x4xf32>
    %103 = arith.subf %99, %102 : vector<4x4xf32>
    %104 = math.exp %103 : vector<4x4xf32>
    %cst_40 = arith.constant dense<0.000000e+00> : vector<4xf32>
    %105 = vector.multi_reduction <add>, %104, %cst_40 [1] : vector<4x4xf32> to vector<4xf32>
    %106 = vector.shape_cast %105 : vector<4xf32> to vector<4x1xf32>
    %107 = tpu.reciprocal %106 {approx = true} : vector<4x1xf32> -> vector<4x1xf32>
    %108 = vector.broadcast %107 : vector<4x1xf32> to vector<4x4xf32>
    %109 = arith.mulf %104, %108 : vector<4x4xf32>
    %110 = arith.truncf %109 : vector<4x4xf32> to vector<4x4xbf16>
    %cst_41 = arith.constant dense<0.000000e+00> : vector<4x8xf32>
    %111 = tpu.matmul %110, %96, %cst_41 {dimension_numbers = #tpu.dot_dimension_numbers<[1], [0], [0], [1], [0, 0, 1, 1], [], []>} : vector<4x4xbf16>, vector<4x8xbf16>, vector<4x8xf32> -> vector<4x8xf32>
    %112 = tpu.concatenate %48, %69, %90, %111 in 1 : vector<4x8xf32>, vector<4x8xf32>, vector<4x8xf32>, vector<4x8xf32> -> vector<4x32xf32>
    %113 = arith.truncf %112 : vector<4x32xf32> to vector<4x32xbf16>
    %c0_42 = arith.constant 0 : index
    %c0_43 = arith.constant 0 : index
    %c0_44 = arith.constant 0 : index
    %114 = vector.load %arg12[%c0_42, %c0_43, %c0_44] : memref<1x32x32xbf16, #tpu.memory_space<vmem>>, vector<1x32x32xbf16>
    %115 = vector.shape_cast %114 : vector<1x32x32xbf16> to vector<32x32xbf16>
    %cst_45 = arith.constant dense<0.000000e+00> : vector<4x32xf32>
    %116 = tpu.matmul %113, %115, %cst_45 {dimension_numbers = #tpu.dot_dimension_numbers<[1], [0], [0], [1], [0, 0, 1, 1], [], []>} : vector<4x32xbf16>, vector<32x32xbf16>, vector<4x32xf32> -> vector<4x32xf32>
    %c0_46 = arith.constant 0 : index
    %c0_47 = arith.constant 0 : index
    %c0_48 = arith.constant 0 : index
    %117 = vector.load %arg13[%c0_46, %c0_47, %c0_48] : memref<1x1x32xf32, #tpu.memory_space<vmem>>, vector<1x1x32xf32>
    %118 = vector.shape_cast %117 : vector<1x1x32xf32> to vector<1x32xf32>
    %119 = vector.broadcast %118 : vector<1x32xf32> to vector<4x32xf32>
    %120 = arith.addf %116, %119 : vector<4x32xf32>
    %121 = arith.addf %3, %120 : vector<4x32xf32>
    %c0_49 = arith.constant 0 : index
    %c0_50 = arith.constant 0 : index
    %c0_51 = arith.constant 0 : index
    %122 = vector.load %arg14[%c0_49, %c0_50, %c0_51] : memref<1x1x32xf32, #tpu.memory_space<vmem>>, vector<1x1x32xf32>
    %123 = vector.shape_cast %122 : vector<1x1x32xf32> to vector<1x32xf32>
    %c0_52 = arith.constant 0 : index
    %c0_53 = arith.constant 0 : index
    %c0_54 = arith.constant 0 : index
    %124 = vector.load %arg15[%c0_52, %c0_53, %c0_54] : memref<1x1x32xf32, #tpu.memory_space<vmem>>, vector<1x1x32xf32>
    %125 = vector.shape_cast %124 : vector<1x1x32xf32> to vector<1x32xf32>
    %cst_55 = arith.constant dense<0.000000e+00> : vector<4xf32>
    %126 = vector.multi_reduction <add>, %121, %cst_55 [1] : vector<4x32xf32> to vector<4xf32>
    %127 = vector.shape_cast %126 : vector<4xf32> to vector<4x1xf32>
    %cst_56 = arith.constant 3.200000e+01 : f32
    %128 = vector.broadcast %cst_56 : f32 to vector<4x1xf32>
    %129 = arith.divf %127, %128 : vector<4x1xf32>
    %130 = vector.broadcast %129 : vector<4x1xf32> to vector<4x32xf32>
    %131 = arith.subf %121, %130 : vector<4x32xf32>
    %132 = arith.mulf %131, %131 : vector<4x32xf32>
    %cst_57 = arith.constant dense<0.000000e+00> : vector<4xf32>
    %133 = vector.multi_reduction <add>, %132, %cst_57 [1] : vector<4x32xf32> to vector<4xf32>
    %134 = vector.shape_cast %133 : vector<4xf32> to vector<4x1xf32>
    %cst_58 = arith.constant 3.200000e+01 : f32
    %135 = vector.broadcast %cst_58 : f32 to vector<4x1xf32>
    %136 = arith.divf %134, %135 : vector<4x1xf32>
    %137 = vector.broadcast %129 : vector<4x1xf32> to vector<4x32xf32>
    %138 = arith.subf %121, %137 : vector<4x32xf32>
    %cst_59 = arith.constant 9.99999974E-6 : f32
    %139 = vector.broadcast %cst_59 : f32 to vector<4x1xf32>
    %140 = arith.addf %136, %139 : vector<4x1xf32>
    %141 = math.rsqrt %140 : vector<4x1xf32>
    %142 = vector.broadcast %141 : vector<4x1xf32> to vector<4x32xf32>
    %143 = arith.mulf %138, %142 : vector<4x32xf32>
    %144 = vector.broadcast %123 : vector<1x32xf32> to vector<4x32xf32>
    %145 = arith.mulf %143, %144 : vector<4x32xf32>
    %146 = vector.broadcast %125 : vector<1x32xf32> to vector<4x32xf32>
    %147 = arith.addf %145, %146 : vector<4x32xf32>
    %148 = arith.truncf %147 : vector<4x32xf32> to vector<4x32xbf16>
    %c0_60 = arith.constant 0 : index
    %c0_61 = arith.constant 0 : index
    %c0_62 = arith.constant 0 : index
    %149 = vector.load %arg16[%c0_60, %c0_61, %c0_62] : memref<1x32x64xbf16, #tpu.memory_space<vmem>>, vector<1x32x64xbf16>
    %150 = vector.shape_cast %149 : vector<1x32x64xbf16> to vector<32x64xbf16>
    %cst_63 = arith.constant dense<0.000000e+00> : vector<4x64xf32>
    %151 = tpu.matmul %148, %150, %cst_63 {dimension_numbers = #tpu.dot_dimension_numbers<[1], [0], [0], [1], [0, 0, 1, 1], [], []>} : vector<4x32xbf16>, vector<32x64xbf16>, vector<4x64xf32> -> vector<4x64xf32>
    %c0_64 = arith.constant 0 : index
    %c0_65 = arith.constant 0 : index
    %c0_66 = arith.constant 0 : index
    %152 = vector.load %arg17[%c0_64, %c0_65, %c0_66] : memref<1x1x64xf32, #tpu.memory_space<vmem>>, vector<1x1x64xf32>
    %153 = vector.shape_cast %152 : vector<1x1x64xf32> to vector<1x64xf32>
    %154 = vector.broadcast %153 : vector<1x64xf32> to vector<4x64xf32>
    %155 = arith.addf %151, %154 : vector<4x64xf32>
    %cst_67 = arith.constant 0.000000e+00 : f32
    %156 = vector.broadcast %cst_67 : f32 to vector<4x64xf32>
    %157 = arith.maximumf %155, %156 : vector<4x64xf32>
    %158 = arith.truncf %157 : vector<4x64xf32> to vector<4x64xbf16>
    %c0_68 = arith.constant 0 : index
    %c0_69 = arith.constant 0 : index
    %c0_70 = arith.constant 0 : index
    %159 = vector.load %arg18[%c0_68, %c0_69, %c0_70] : memref<1x64x32xbf16, #tpu.memory_space<vmem>>, vector<1x64x32xbf16>
    %160 = vector.shape_cast %159 : vector<1x64x32xbf16> to vector<64x32xbf16>
    %cst_71 = arith.constant dense<0.000000e+00> : vector<4x32xf32>
    %161 = tpu.matmul %158, %160, %cst_71 {dimension_numbers = #tpu.dot_dimension_numbers<[1], [0], [0], [1], [0, 0, 1, 1], [], []>} : vector<4x64xbf16>, vector<64x32xbf16>, vector<4x32xf32> -> vector<4x32xf32>
    %c0_72 = arith.constant 0 : index
    %c0_73 = arith.constant 0 : index
    %c0_74 = arith.constant 0 : index
    %162 = vector.load %arg19[%c0_72, %c0_73, %c0_74] : memref<1x1x32xf32, #tpu.memory_space<vmem>>, vector<1x1x32xf32>
    %163 = vector.shape_cast %162 : vector<1x1x32xf32> to vector<1x32xf32>
    %164 = vector.broadcast %163 : vector<1x32xf32> to vector<4x32xf32>
    %165 = arith.addf %161, %164 : vector<4x32xf32>
    %166 = arith.addf %147, %165 : vector<4x32xf32>
    %c0_75 = arith.constant 0 : index
    %c0_76 = arith.constant 0 : index
    %c0_77 = arith.constant 0 : index
    %167 = vector.load %arg20[%c0_75, %c0_76, %c0_77] : memref<1x1x32xf32, #tpu.memory_space<vmem>>, vector<1x1x32xf32>
    %168 = vector.shape_cast %167 : vector<1x1x32xf32> to vector<1x32xf32>
    %c0_78 = arith.constant 0 : index
    %c0_79 = arith.constant 0 : index
    %c0_80 = arith.constant 0 : index
    %169 = vector.load %arg21[%c0_78, %c0_79, %c0_80] : memref<1x1x32xf32, #tpu.memory_space<vmem>>, vector<1x1x32xf32>
    %170 = vector.shape_cast %169 : vector<1x1x32xf32> to vector<1x32xf32>
    %cst_81 = arith.constant dense<0.000000e+00> : vector<4xf32>
    %171 = vector.multi_reduction <add>, %166, %cst_81 [1] : vector<4x32xf32> to vector<4xf32>
    %172 = vector.shape_cast %171 : vector<4xf32> to vector<4x1xf32>
    %cst_82 = arith.constant 3.200000e+01 : f32
    %173 = vector.broadcast %cst_82 : f32 to vector<4x1xf32>
    %174 = arith.divf %172, %173 : vector<4x1xf32>
    %175 = vector.broadcast %174 : vector<4x1xf32> to vector<4x32xf32>
    %176 = arith.subf %166, %175 : vector<4x32xf32>
    %177 = arith.mulf %176, %176 : vector<4x32xf32>
    %cst_83 = arith.constant dense<0.000000e+00> : vector<4xf32>
    %178 = vector.multi_reduction <add>, %177, %cst_83 [1] : vector<4x32xf32> to vector<4xf32>
    %179 = vector.shape_cast %178 : vector<4xf32> to vector<4x1xf32>
    %cst_84 = arith.constant 3.200000e+01 : f32
    %180 = vector.broadcast %cst_84 : f32 to vector<4x1xf32>
    %181 = arith.divf %179, %180 : vector<4x1xf32>
    %182 = vector.broadcast %174 : vector<4x1xf32> to vector<4x32xf32>
    %183 = arith.subf %166, %182 : vector<4x32xf32>
    %cst_85 = arith.constant 9.99999974E-6 : f32
    %184 = vector.broadcast %cst_85 : f32 to vector<4x1xf32>
    %185 = arith.addf %181, %184 : vector<4x1xf32>
    %186 = math.rsqrt %185 : vector<4x1xf32>
    %187 = vector.broadcast %186 : vector<4x1xf32> to vector<4x32xf32>
    %188 = arith.mulf %183, %187 : vector<4x32xf32>
    %189 = vector.broadcast %168 : vector<1x32xf32> to vector<4x32xf32>
    %190 = arith.mulf %188, %189 : vector<4x32xf32>
    %191 = vector.broadcast %170 : vector<1x32xf32> to vector<4x32xf32>
    %192 = arith.addf %190, %191 : vector<4x32xf32>
    %c0_86 = arith.constant 0 : index
    %c0_87 = arith.constant 0 : index
    %193 = vector.load %arg25[%c0_86, %c0_87] : memref<4x32xf32, #tpu.memory_space<vmem>>, vector<4x32xf32>
    tpu.vector_store %arg25[%c0_86, %c0_87], %192 {strides = array<i32>} : memref<4x32xf32, #tpu.memory_space<vmem>>, vector<4x32xf32>,
    %c1_i32 = arith.constant 1 : i32
    %194 = arith.cmpi eq, %arg1, %c1_i32 : i32
    %195 = arith.extui %194 : i1 to i32
    %c0_i32_88 = arith.constant 0 : i32
    %196 = arith.cmpi ne, %195, %c0_i32_88 : i32
    scf.if %196 {
      %197 = vector.extract_strided_slice %192 {offsets = [0, 0], sizes = [1, 32], strides = [1, 1]} : vector<4x32xf32> to vector<1x32xf32>
      %c0_89 = arith.constant 0 : index
      %c0_90 = arith.constant 0 : index
      %198 = vector.load %arg22[%c0_89, %c0_90] : memref<32x128xf32, #tpu.memory_space<vmem>>, vector<32x128xf32>
      %cst_91 = arith.constant dense<0.000000e+00> : vector<1x128xf32>
      %199 = tpu.matmul %197, %198, %cst_91 {dimension_numbers = #tpu.dot_dimension_numbers<[1], [0], [0], [1], [0, 0, 1, 1], [], []>} : vector<1x32xf32>, vector<32x128xf32>, vector<1x128xf32> -> vector<1x128xf32>
      %c0_92 = arith.constant 0 : index
      %c0_93 = arith.constant 0 : index
      %200 = vector.load %arg23[%c0_92, %c0_93] : memref<1x128xf32, #tpu.memory_space<vmem>>, vector<1x128xf32>
      %201 = arith.addf %199, %200 : vector<1x128xf32>
      %c0_94 = arith.constant 0 : index
      %c0_95 = arith.constant 0 : index
      %c0_96 = arith.constant 0 : index
      %202 = vector.load %arg24[%c0_94, %c0_95, %c0_96] : memref<1x1x128xf32, #tpu.memory_space<vmem>>, vector<1x1x128xf32>
      %203 = vector.shape_cast %202 : vector<1x1x128xf32> to vector<1x128xf32>
      %204 = vector.shape_cast %201 : vector<1x128xf32> to vector<1x1x128xf32>
      tpu.vector_store %arg24[%c0_94, %c0_95, %c0_96], %204 {strides = array<i32>} : memref<1x1x128xf32, #tpu.memory_space<vmem>>, vector<1x1x128xf32>,
    } else {
    }
    return
  }
  func.func @transform_0(%arg0: i32, %arg1: i32) -> (i32, i32, i32) {
    %c0_i32 = arith.constant 0 : i32
    %c0_i32_0 = arith.constant 0 : i32
    %c0_i32_1 = arith.constant 0 : i32
    return %arg0, %c0_i32, %c0_i32_0 : i32, i32, i32
  }
  func.func @transform_1(%arg0: i32, %arg1: i32) -> (i32, i32) {
    %c0_i32 = arith.constant 0 : i32
    %c0_i32_0 = arith.constant 0 : i32
    %c0_i32_1 = arith.constant 0 : i32
    return %c0_i32, %c0_i32_0 : i32, i32
  }
  func.func @transform_2(%arg0: i32, %arg1: i32) -> (i32, i32) {
    %c0_i32 = arith.constant 0 : i32
    %c0_i32_0 = arith.constant 0 : i32
    %c0_i32_1 = arith.constant 0 : i32
    return %c0_i32, %c0_i32_0 : i32, i32
  }
  func.func @transform_3(%arg0: i32, %arg1: i32) -> (i32, i32) {
    %c0_i32 = arith.constant 0 : i32
    %c0_i32_0 = arith.constant 0 : i32
    %c0_i32_1 = arith.constant 0 : i32
    return %c0_i32, %c0_i32_0 : i32, i32
  }
  func.func @transform_4(%arg0: i32, %arg1: i32) -> (i32, i32, i32) {
    %c0_i32 = arith.constant 0 : i32
    %c0_i32_0 = arith.constant 0 : i32
    %c0_i32_1 = arith.constant 0 : i32
    return %arg1, %c0_i32, %c0_i32_0 : i32, i32, i32
  }
  func.func @transform_5(%arg0: i32, %arg1: i32) -> (i32, i32, i32) {
    %c0_i32 = arith.constant 0 : i32
    %c0_i32_0 = arith.constant 0 : i32
    %c0_i32_1 = arith.constant 0 : i32
    return %arg1, %c0_i32, %c0_i32_0 : i32, i32, i32
  }
  func.func @transform_6(%arg0: i32, %arg1: i32) -> (i32, i32, i32) {
    %c0_i32 = arith.constant 0 : i32
    %c0_i32_0 = arith.constant 0 : i32
    %c0_i32_1 = arith.constant 0 : i32
    return %arg1, %c0_i32, %c0_i32_0 : i32, i32, i32
  }
  func.func @transform_7(%arg0: i32, %arg1: i32) -> (i32, i32, i32) {
    %c0_i32 = arith.constant 0 : i32
    %c0_i32_0 = arith.constant 0 : i32
    %c0_i32_1 = arith.constant 0 : i32
    return %arg1, %c0_i32, %c0_i32_0 : i32, i32, i32
  }
  func.func @transform_8(%arg0: i32, %arg1: i32) -> (i32, i32, i32) {
    %c0_i32 = arith.constant 0 : i32
    %c0_i32_0 = arith.constant 0 : i32
    %c0_i32_1 = arith.constant 0 : i32
    return %arg1, %c0_i32, %c0_i32_0 : i32, i32, i32
  }
  func.func @transform_9(%arg0: i32, %arg1: i32) -> (i32, i32, i32) {
    %c0_i32 = arith.constant 0 : i32
    %c0_i32_0 = arith.constant 0 : i32
    %c0_i32_1 = arith.constant 0 : i32
    return %arg1, %c0_i32, %c0_i32_0 : i32, i32, i32
  }
  func.func @transform_10(%arg0: i32, %arg1: i32) -> (i32, i32, i32) {
    %c0_i32 = arith.constant 0 : i32
    %c0_i32_0 = arith.constant 0 : i32
    %c0_i32_1 = arith.constant 0 : i32
    return %arg1, %c0_i32, %c0_i32_0 : i32, i32, i32
  }
  func.func @transform_11(%arg0: i32, %arg1: i32) -> (i32, i32, i32) {
    %c0_i32 = arith.constant 0 : i32
    %c0_i32_0 = arith.constant 0 : i32
    %c0_i32_1 = arith.constant 0 : i32
    return %arg1, %c0_i32, %c0_i32_0 : i32, i32, i32
  }
  func.func @transform_12(%arg0: i32, %arg1: i32) -> (i32, i32, i32) {
    %c0_i32 = arith.constant 0 : i32
    %c0_i32_0 = arith.constant 0 : i32
    %c0_i32_1 = arith.constant 0 : i32
    return %arg1, %c0_i32, %c0_i32_0 : i32, i32, i32
  }
  func.func @transform_13(%arg0: i32, %arg1: i32) -> (i32, i32, i32) {
    %c0_i32 = arith.constant 0 : i32
    %c0_i32_0 = arith.constant 0 : i32
    %c0_i32_1 = arith.constant 0 : i32
    return %arg1, %c0_i32, %c0_i32_0 : i32, i32, i32
  }
  func.func @transform_14(%arg0: i32, %arg1: i32) -> (i32, i32, i32) {
    %c0_i32 = arith.constant 0 : i32
    %c0_i32_0 = arith.constant 0 : i32
    %c0_i32_1 = arith.constant 0 : i32
    return %arg1, %c0_i32, %c0_i32_0 : i32, i32, i32
  }
  func.func @transform_15(%arg0: i32, %arg1: i32) -> (i32, i32, i32) {
    %c0_i32 = arith.constant 0 : i32
    %c0_i32_0 = arith.constant 0 : i32
    %c0_i32_1 = arith.constant 0 : i32
    return %arg1, %c0_i32, %c0_i32_0 : i32, i32, i32
  }
  func.func @transform_16(%arg0: i32, %arg1: i32) -> (i32, i32, i32) {
    %c0_i32 = arith.constant 0 : i32
    %c0_i32_0 = arith.constant 0 : i32
    %c0_i32_1 = arith.constant 0 : i32
    return %arg1, %c0_i32, %c0_i32_0 : i32, i32, i32
  }
  func.func @transform_17(%arg0: i32, %arg1: i32) -> (i32, i32, i32) {
    %c0_i32 = arith.constant 0 : i32
    %c0_i32_0 = arith.constant 0 : i32
    %c0_i32_1 = arith.constant 0 : i32
    return %arg1, %c0_i32, %c0_i32_0 : i32, i32, i32
  }
  func.func @transform_18(%arg0: i32, %arg1: i32) -> (i32, i32, i32) {
    %c0_i32 = arith.constant 0 : i32
    %c0_i32_0 = arith.constant 0 : i32
    %c0_i32_1 = arith.constant 0 : i32
    return %arg1, %c0_i32, %c0_i32_0 : i32, i32, i32
  }
  func.func @transform_19(%arg0: i32, %arg1: i32) -> (i32, i32, i32) {
    %c0_i32 = arith.constant 0 : i32
    %c0_i32_0 = arith.constant 0 : i32
    %c0_i32_1 = arith.constant 0 : i32
    return %arg1, %c0_i32, %c0_i32_0 : i32, i32, i32
  }
  func.func @transform_20(%arg0: i32, %arg1: i32) -> (i32, i32) {
    %c0_i32 = arith.constant 0 : i32
    %c0_i32_0 = arith.constant 0 : i32
    %c0_i32_1 = arith.constant 0 : i32
    return %c0_i32, %c0_i32_0 : i32, i32
  }
  func.func @transform_21(%arg0: i32, %arg1: i32) -> (i32, i32) {
    %c0_i32 = arith.constant 0 : i32
    %c0_i32_0 = arith.constant 0 : i32
    %c0_i32_1 = arith.constant 0 : i32
    return %c0_i32, %c0_i32_0 : i32, i32
  }
  func.func @transform_22(%arg0: i32, %arg1: i32) -> (i32, i32, i32) {
    %c0_i32 = arith.constant 0 : i32
    %c0_i32_0 = arith.constant 0 : i32
    %c0_i32_1 = arith.constant 0 : i32
    return %arg0, %c0_i32, %c0_i32_0 : i32, i32, i32
  }
}

</mosaic_0001>

<bundles_post_ra>
// kernel: tpu_custom_call.1
= control target key start
LH: loop header
LB: loop body
LE: loop exit
PB: predicated region body
PF: predicated region fallthrough
CT: control target
= control target key end

     0   :  { %s3662_s0 = inlined_call_operand.hbm [shape: f32[2,4,192], index: 0, kind: input, shape index: {}]   ;;  %s3663_s1 = inlined_call_operand.hbm [shape: f32[4,32], index: 1, kind: input, shape index: {}]   ;;  %s3664_s2 = inlined_call_operand.vmem [shape: bf16[192,32], index: 2, kind: input, shape index: {}]   ;;  %s3665_s3 = inlined_call_operand.hbm [shape: f32[1,32], index: 3, kind: input, shape index: {}]   ;;  %s3666_s4 = inlined_call_operand.vmem [shape: bf16[2,32,32], index: 4, kind: input, shape index: {}]   ;;  %s3667_s5 = inlined_call_operand.vmem [shape: f32[2,1,32], index: 5, kind: input, shape index: {}]   ;;  %s3668_s6 = inlined_call_operand.vmem [shape: bf16[2,32,32], index: 6, kind: input, shape index: {}]   ;;  %s3669_s7 = inlined_call_operand.vmem [shape: f32[2,1,32], index: 7, kind: input, shape index: {}]   ;;  %s3670_s8 = inlined_call_operand.vmem [shape: bf16[2,32,32], index: 8, kind: input, shape index: {}]   ;;  %s3671_s9 = inlined_call_operand.vmem [shape: f32[2,1,32], index: 9, kind: input, shape index: {}]   ;;  %s3672_s10 = inlined_call_operand.vmem [shape: bf16[2,32,32], index: 10, kind: input, shape index: {}]   ;;  %s3673_s11 = inlined_call_operand.vmem [shape: f32[2,1,32], index: 11, kind: input, shape index: {}]   ;;  %s3674_s12 = inlined_call_operand.vmem [shape: f32[2,1,32], index: 12, kind: input, shape index: {}]   ;;  %s3675_s13 = inlined_call_operand.vmem [shape: f32[2,1,32], index: 13, kind: input, shape index: {}]   ;;  %s3676_s14 = inlined_call_operand.vmem [shape: bf16[2,32,64], index: 14, kind: input, shape index: {}]   ;;  %s3677_s15 = inlined_call_operand.vmem [shape: f32[2,1,64], index: 15, kind: input, shape index: {}]   ;;  %s3678_s16 = inlined_call_operand.vmem [shape: bf16[2,64,32], index: 16, kind: input, shape index: {}]   ;;  %s3679_s17 = inlined_call_operand.vmem [shape: f32[2,1,32], index: 17, kind: input, shape index: {}]   ;;  %s3680_s18 = inlined_call_operand.vmem [shape: f32[2,1,32], index: 18, kind: input, shape index: {}]   ;;  %s3681_s19 = inlined_call_operand.vmem [shape: f32[2,1,32], index: 19, kind: input, shape index: {}]   ;;  %s3682_s20 = inlined_call_operand.vmem [shape: f32[32,128], index: 20, kind: input, shape index: {}]   ;;  %s3683_s21 = inlined_call_operand.vmem [shape: f32[1,128], index: 21, kind: input, shape index: {}]   ;;  %s3684_s22 = inlined_call_operand.hbm [shape: f32[2,1,128], index: 22, kind: output, shape index: {}]  }
   0x1   :  { %3704 = sst [smem:[#allocation26_spill]] %s3662_s0 }
   0x2   :  { %3705 = sst [smem:[#allocation27_spill]] %s3663_s1 }
   0x3   :  { %3706 = sst [smem:[#allocation28_spill]] %s3664_s2 }
   0x4   :  { %3707 = sst [smem:[#allocation29_spill]] %s3665_s3 }
   0x5   :  { %3708 = sst [smem:[#allocation30_spill]] %s3666_s4 }
   0x6   :  { %3709 = sst [smem:[#allocation31_spill]] %s3667_s5 }
   0x7   :  { %3710 = sst [smem:[#allocation32_spill]] %s3668_s6 }
   0x8   :  { %3711 = sst [smem:[#allocation33_spill]] %s3670_s8 }
   0x9   :  { %3712 = sst [smem:[#allocation34_spill]] %s3672_s10 }
   0xa   :  { %3713 = sst [smem:[#allocation35_spill]] %s3673_s11 }
   0xb   :  { %3714 = sst [smem:[#allocation36_spill]] %s3674_s12 }
   0xc   :  { %3715 = sst [smem:[#allocation37_spill]] %s3675_s13 }
   0xd   :  { %3716 = sst [smem:[#allocation38_spill]] %s3676_s14 }
   0xe   :  { %3717 = sst [smem:[#allocation39_spill]] %s3677_s15 }
   0xf   :  { %3718 = sst [smem:[#allocation40_spill]] %s3678_s16 }
  0x10   :  { %3719 = sst [smem:[#allocation41_spill]] %s3679_s17 }
  0x11   :  { %3720 = sst [smem:[#allocation42_spill]] %s3680_s18 }
  0x12   :  { %3721 = sst [smem:[#allocation43_spill]] %s3681_s19 }
  0x13   :  { %3722 = sst [smem:[#allocation44_spill]] %s3682_s20 }
  0x14   :  { %3723 = sst [smem:[#allocation45_spill]] %s3683_s21 }
  0x15   :  { %3724 = sst [smem:[#allocation46_spill]] %s3684_s22 }
  0x16   :  { %27 = vsyncpa [#allocation4], 0 }
  0x17   :  { %29 = vsyncpa [#allocation4 + $0x1], 0 }
  0x18   :  { %30 = vsyncpa [#allocation7], 0 }
  0x19   :  { %31 = vsyncpa [#allocation5], 0 }
  0x1a   :  { %33 = vsyncpa [#allocation5 + $0x1], 0  ;;  %s3165_s3 = smov 0   ;;  %s3167_s28 = smov 0  }
  0x1b   :  { %s3169_s29 = smov 0   ;;  %s3171_s30 = smov 0  }
  0x1c   :  { %s3173_s4 = smov 0   ;;  %s3175_s0 = smov 0  }
  0x1d   :  { %s3177_s23 = smov 0   ;;  %s3179_s1 = smov 0  }
  0x1e LB: > { %3725 = sst [smem:[#allocation13_spill]] %s3005_s3  ;;  %s2454_s5 = sadd.s32 4294967295, %s3033_s1   ;;  %s3033_s1 = sphi %s3179_s1, %s39_s1   ;;  %s3029_s23 = sphi %s3177_s23, %s3799_s23   ;;  %s3025_s0 = sphi %s3175_s0, %s3798_s0   ;;  %s3021_s4 = sphi %s3173_s4, %s3797_s4   ;;  %s3017_s30 = sphi %s3171_s30, %s3796_s30   ;;  %s3013_s29 = sphi %s3169_s29, %s3795_s29   ;;  %s3009_s28 = sphi %s3167_s28, %s3794_s28   ;;  %s3005_s3 = sphi %s3165_s3, %s3793_s3  }
  0x1f   : > { %3726 = sst [smem:[#allocation14_spill]] %s3009_s28  ;;  %s2455_s24 = sadd.s32 4294967294, %s3033_s1  }
  0x20   : > { %3727 = sst [smem:[#allocation15_spill]] %s3013_s29  ;;  %p71_p0 = scmp.ne.s32.totalorder %s3009_s28, %s3005_s3 }
  0x21   : > { %3728 = sst [smem:[#allocation16_spill]] %s3021_s4  ;;  %p3209_p1 = scmp.eq.s32.totalorder %s2454_s5, 0 }
  0x22   : > { %3729 = sst [smem:[#allocation17_spill]] %s3025_s0  ;;  %p3213_p2 = scmp.eq.s32.totalorder %s2454_s5, 3 }
  0x23   : > { %3730 = sst [smem:[#allocation18_spill]] %s3029_s23  ;;  %p622_p3 = scmp.eq.s32.totalorder %s2455_s24, 3 }
  0x24   : > { %3731 = sst [smem:[#allocation19_spill]] %s3033_s1  ;;  %p3219_p4 = por %p3209_p1, %p71_p0 }
  0x25   : > { %s3732_s6 = scalar_select %p3209_p1, 1, 0 }
  0x26   : > { %s3734_s26 = scalar_select %p3219_p4, 1, 0 }
  0x27   : > { %p2456_p5 = scmp.ge.s32.totalorder %s3033_s1, 1  ;;  %p3224_p6 = por %p622_p3, %p71_p0 }
  0x28   : > { %p629_p7 = scmp.lt.s32.totalorder %s3033_s1, 5  ;;  %s3035_s5 = smov [#allocation6]  }
  0x29   : > { %s3735_s2 = scalar_select %p3224_p6, 1, 0 }
  0x2a   : > { %p3229_p8 = pnand %p2456_p5, %p629_p7  ;;  %s642_s3 = sshll.u32 %s3035_s5, 4  ;;  %s643_s3 = int_to_ptr.vmem [resolvable:$true] %s642_s3 }
  0x2b   : > { %3736 = sst [smem:[#allocation20_spill]] %s3735_s2  ;;  %s3036_s24 = smov [#allocation8]  }
  0x2c   : > { %s3737_s27 = scalar_select %p3229_p8, 1, 0 }
  0x2d   : > { %p2708_p9 = pneg %p3229_p8  ;;  %s656_s22 = sshll.u32 %s3036_s24, 4  ;;  %s657_s22 = int_to_ptr.vmem [resolvable:$true] %s656_s22 }
  0x2e   : > { %s2864_s2 = scalar_lea.vmem %s643_s3, 64  ;;  %p2872_p3 = scmp.lt.s32.totalorder %s643_s3, %s643_s3 }
  0x2f   : > { %p3237_p10 = pnand %p2708_p9, %p3209_p1  ;;  %p2865_p12 = scmp.ne.s32.totalorder %s643_s3, %s2864_s2 }
  0x30   : > { %p2873_p5 = scmp.lt.s32.totalorder %s2864_s2, %s2864_s2 }
  0x31   : > { %p2855_p11 = pneg %p3237_p10 }
  0x32   : > { %p2874_p7 = por %p2873_p5, %p2872_p3 }
  0x33   : > { %p2867_p13 = pnand %p2865_p12, %p2855_p11 }
  0x35   : > { %p2868_p0 = pneg %p2867_p13 }
  0x37   : > { %p2875_p6 = pnand %p2874_p7, %p2868_p0 }
  0x39   : > { %2878 = shalt.err (!%p2875_p6)
}
  0x3a   : > { %s3739_s21 = sld [smem:[#allocation27_spill]]  ;;  %s2890_s20 = scalar_lea.vmem %s657_s22, 16 }
  0x3b   : > { %p2891_p9 = scmp.ne.s32.totalorder %s657_s22, %s2890_s20  ;;  %s2897_s19 = scalar_lea.vmem %s657_s22, 32 }
  0x3c   : > { %p2898_p12 = scmp.lt.s32.totalorder %s657_s22, %s657_s22  ;;  %p2899_p13 = scmp.lt.s32.totalorder %s2897_s19, %s2890_s20 }
  0x3d   : > { %p2893_p1 = pnand %p2891_p9, %p2855_p11 }
  0x3e   : > { %p2900_p8 = por %p2899_p13, %p2898_p12 }
  0x3f   : > { %p2894_p4 = pneg %p2893_p1 }
  0x40   : > { %2711 = dma.hbm_to_vmem [thread:$0]  (!%p3237_p10), %s3739_s21, 64, %s643_s3, [#allocation7]  }
  0x41   : > { %p2901_p3 = pnand %p2900_p8, %p2894_p4 }
  0x43   : > { %2904 = shalt.err (!%p2901_p3)
}
  0x44   : > { %s3740_s17 = sld [smem:[#allocation29_spill]]  ;;  %s48_s19 = sadd.s32 1, %s3025_s0 }
  0x45   : > { %s51_s20 = sadd.s32 1, %s3029_s23  ;;  %p49_p1 = scmp.ge.s32.totalorder %s48_s19, 2 }
  0x46   : > { %s58_s21 = sadd.s32 1, %s3013_s29  ;;  %p65_p4 = scmp.ne.s32.totalorder %s3013_s29, %s3009_s28 }
  0x47   : > { %p66_p6 = scmp.eq.s32.totalorder %s3033_s1, 0  ;;  %s3801_s19 = smov (%p49_p1, %s48_s19), 0 }
  0x48   : > { %3741 = sst [smem:[#allocation21_spill]] %s3801_s19  ;;  %s3803_s20 = smov (!%p49_p1, %s51_s20), %s3029_s23 }
  0x49   : > { %p3268_p8 = por %p66_p6, %p65_p4  ;;  %p3274_p11 = por %p3213_p2, %p65_p4 }
  0x4a   : > { %2714 = dma.hbm_to_vmem [thread:$0]  (!%p3237_p10), %s3740_s17, 16, %s657_s22, [#allocation7]  }
  0x4b   : > { %s3743_s3 = scalar_select %p3274_p11, 1, 0 }
  0x4c   : > { %p53_p10 = scmp.ge.s32.totalorder %s3803_s20, 2  ;;  %p2725_p0 = scmp.lt.s32.totalorder %s3033_s1, 4 }
  0x4d   : > { %3744 = sst [smem:[#allocation22_spill]] %s3743_s3  ;;  %s673_s17 = sand.u32 1, %s3013_s29  }
  0x4e   : > { %s2537_s22 = sshll.u32 %s3029_s23, 7  ;;  %s3805_s20 = smov (%p53_p10, %s3803_s20), 0 }
  0x4f   : > { %3745 = sst [smem:[#allocation23_spill]] %s3805_s20  ;;  %s2460_s4 = sshll.u32 %s673_s17, 3 }
  0x50   : > { %s55_s5 = ssub.s32 %s3029_s23, %s3805_s20  ;;  %s3746_s19 = sld [smem:[#allocation26_spill]] }
  0x51   : > { %p56_p5 = scmp.eq.s32.totalorder %s55_s5, 0  ;;  %s677_s25 = scalar_lea.vmem [#allocation3], %s2460_s4 }
  0x52   : > { %s685_s16 = sshll.u32 %s677_s25, 4  ;;  %p3290_p2 = pnand %p2725_p0, %p3268_p8  ;;  %s686_s16 = int_to_ptr.vmem [resolvable:$true] %s685_s16 }
  0x53   : > { %s3295_s1 = scalar_select %p56_p5, %s3013_s29, %s58_s21  }
  0x54   : > { %s674_s3 = scalar_lea.sflag [#allocation4], %s673_s17  ;;  %p2907_p7 = pneg %p3290_p2 }
  0x55   : > { %3748 = sst [smem:[#allocation24_spill]] %s3295_s1  ;;  %s2918_s20 = scalar_lea.vmem %s686_s16, 128 }
  0x56   : > { %s683_s0 = scalar_lea.hbm %s3746_s19, %s2537_s22  ;;  %p2919_p9 = scmp.ne.s32.totalorder %s686_s16, %s2918_s20 }
  0x57   : > { %s3037_s5 = smov [#allocation3]  }
  0x58   : > { %p2921_p12 = pnand %p2919_p9, %p2907_p7  ;;  %s2923_s19 = sshll.u32 %s3037_s5, 4  ;;  %s2924_s19 = int_to_ptr.vmem [resolvable:$false] %s2923_s19 }
  0x59   : > { %s2925_s22 = scalar_lea.vmem %s2924_s19, 256  ;;  %p2926_p3 = scmp.lt.s32.totalorder %s686_s16, %s2924_s19 }
  0x5a   : > { %p2922_p13 = pneg %p2921_p12  ;;  %p2927_p1 = scmp.lt.s32.totalorder %s2925_s22, %s2918_s20 }
  0x5c   : > { %p2928_p4 = por %p2927_p1, %p2926_p3 }
  0x5e   : > { %p2929_p6 = pnand %p2928_p4, %p2922_p13 }
  0x60   : > { %2932 = shalt.err (!%p2929_p6)
}
  0x61   : > { %2718 = dma.hbm_to_vmem [thread:$0]  (!%p3290_p2), %s683_s0, 128, %s686_s16, %s674_s3  }
  0x62   : > { %p3749_p8 = scmp.ne.s32.totalorder %s3737_s27, 0 }
  0x64   : > { %802 = sbr.rel (%p3749_p8) target bundleno = 2986 (0xbaa), region = 108 }
  0x69   : > { %s3304_s21 = sand.u32 1, %s3009_s28   ;;  %p3750_p10 = scmp.ne.s32.totalorder %s3734_s26, 0 }
  0x6a   : > { %s2464_s18 = sshll.u32 %s3304_s21, 3  ;;  %s805_s17 = scalar_lea.sflag [#allocation4], %s3304_s21 }
  0x6b   : > { %s3308_s4 = scalar_lea.vmem [#allocation3], %s2464_s18 }
  0x6c   : > { %2992 = dma.done.wait (%p3750_p10), %s805_s17, 128  }
  0x6d   : > { %2994 = vsyncadd (%p3750_p10), %s805_s17, 4294967168  ;;  %p3751_p0 = scmp.ne.s32.totalorder %s3732_s6, 0 }
  0x6f   : > { %2996 = dma.done.wait (%p3751_p0), [#allocation7], 80  }
  0x70   : > { %2998 = vsyncadd (%p3751_p0), [#allocation7], 4294967216  ;;  %p936_p5 = scmp.lt.s32.totalorder %s3017_s30, 1  ;;  %s3753_s24 = sld [smem:[#allocation30_spill]] }
  0x71   : > { %s3754_s19 = sld [smem:[#allocation32_spill]]  ;;  %s935_s27 = scalar_lea.vmem [#allocation9], %s3304_s21 }
  0x72   : > { %s3320_s15 = scalar_select %p936_p5, %s3017_s30, 1 }
  0x73   : > { %s3755_s8 = sld [smem:[#allocation33_spill]]  ;;  %p2479_p2 = scmp.ne.s32.totalorder %s3017_s30, 0 }
  0x74   : > { %s2538_s16 = sshll.u32 %s3320_s15, 4  ;;  %s3756_s10 = sld [smem:[#allocation34_spill]] }
  0x75   : > { %s3761_s14 = sld [smem:[#allocation38_spill]] }
  0x76   : > { %s3330_s2 = scalar_lea.vmem %s3753_s24, %s2538_s16  ;;  %s3762_s3 = sld [smem:[#allocation39_spill]] }
  0x77   : > { %s3335_s22 = scalar_lea.vmem %s3754_s19, %s2538_s16  ;;  %s3763_s29 = sld [smem:[#allocation40_spill]] }
  0x78   : > { %s3764_s23 = sld [smem:[#allocation41_spill]] }
  0x79   : > { %s3344_s26 = scalar_lea.vmem %s3755_s8, %s2538_s16  ;;  %s3765_s13 = sld [smem:[#allocation42_spill]] }
  0x7a   : > { %s3353_s25 = scalar_lea.vmem %s3756_s10, %s2538_s16 }
  0x7b   : > { %3757 = sst [smem:[#allocation25_spill]] %s3353_s25  ;;  %s3370_s20 = scalar_lea.vmem %s3761_s14, %s2538_s16 }
  0x7c   : > { %s981_s10 = scalar_lea.vmem %s3762_s3, %s3320_s15  ;;  %s2543_s25 = sshll.u32 %s3320_s15, 5 }
  0x7d   : > { %s3380_s11 = scalar_lea.vmem %s3763_s29, %s2543_s25  ;;  %s3766_s14 = sld [smem:[#allocation43_spill]] }
  0x7e   : > { %s989_s1 = scalar_lea.vmem %s3764_s23, %s3320_s15  ;;  %s3767_s29 = sld [smem:[#allocation28_spill]] (!%p2479_p2) }
  0x7f   : > { %s992_s28 = scalar_lea.vmem %s3765_s13, %s3320_s15  ;;  %1000 = sbr.rel (%p2479_p2) target bundleno = 380 (0x17c), region = 124 }
  0x83   : > { %s995_s12 = scalar_lea.vmem %s3766_s14, %s3320_s15 }
  0x84   : > { %s3768_s25 = smov %s3767_s29  ;;  %v2806_v0 = vld [vmem:[%s3767_s29 + $0x38] sm:$0xff]   ;;  %v3038_v1 = vmov 0   ;;  %v1001_v5 = vld [vmem:[%s3308_s4] sm:$0xff]  ;;  %vm1110_vm0 = vcmask 523264   ;;  %v1154_v19 = vld [vmem:[#allocation6] sm:$0xf] }
  0x85   : > { %1114 = vmatprep.subr.bf16.mxu0 %v3038_v1  ;;  %v2807_v2 = vld [vmem:[%s3768_s25 + $0x30] sm:$0xff]   ;;  %v2808_v3 = vld [vmem:[%s3768_s25 + $0x28] sm:$0xff]   ;;  %v2809_v4 = vld [vmem:[%s3768_s25 + $0x20] sm:$0xff]   ;;  %v1003_v6 = vcombine.high %v1001_v5, %v1001_v5  ;;  %v1005_v16 = vpack.c.bf16 %v1001_v5, %v1001_v5  ;;  %vm1156_vm1 = vcmask 257024  }
  0x86   : > { %1115 = vmatpush1.bf16.msra.mxu0 %v2806_v0  ;;  %v2810_v7 = vld [vmem:[%s3768_s25 + $0x18] sm:$0xff]   ;;  %v2811_v9 = vld [vmem:[%s3768_s25 + $0x10] sm:$0xff]   ;;  %v2812_v10 = vld [vmem:[%s3768_s25 + $0x8] sm:$0xff]  }
  0x87   : > { %1116 = vmatprep.subr.bf16.mxu0 %v3038_v1  ;;  %v1006_v8 = vpack.c.bf16 %v1003_v6, %v1003_v6  ;;  %v2813_v11 = vld [vmem:[%s3768_s25] sm:$0xff]   ;;  %v2814_v12 = vld [vmem:[%s3768_s25 + $0x58] sm:$0xff]   ;;  %v2815_v13 = vld [vmem:[%s3768_s25 + $0x50] sm:$0xff]  }
  0x88   : > { %v2816_v14 = vld [vmem:[%s3768_s25 + $0x48] sm:$0xff]   ;;  %v2817_v15 = vld [vmem:[%s3768_s25 + $0x40] sm:$0xff]   ;;  %v2480_v17 = vld [vmem:[#allocation8] ss:$0 sm:$0xff] }
  0x89   : > { %2493 = vmatprep.mubr.msk.bf16.mxu0 %vm1110_vm0, %v1006_v8 }
  0x8a   : > { %1117 = vmatpush1.bf16.msra.mxu0 %v2807_v2 }
  0x8b   : > { %1118 = vmatprep.subr.bf16.mxu0 %v3038_v1 }
  0x8e   : > { %1119 = vmatpush1.bf16.msra.mxu0 %v2808_v3 }
  0x8f   : > { %1120 = vmatprep.subr.bf16.mxu0 %v3038_v1 }
  0x92   : > { %1121 = vmatpush1.bf16.msra.mxu0 %v2809_v4 }
  0x93   : > { %1122 = vmatprep.subr.bf16.mxu0 %v3038_v1 }
  0x96   : > { %1123 = vmatpush1.bf16.msra.mxu0 %v2810_v7 }
  0x97   : > { %1124 = vmatprep.subr.bf16.mxu0 %v3038_v1 }
  0x9a   : > { %1125 = vmatpush1.bf16.msra.mxu0 %v2811_v9 }
  0x9b   : > { %1126 = vmatprep.subr.bf16.mxu0 %v3038_v1 }
  0x9e   : > { %1127 = vmatpush1.bf16.msra.mxu0 %v2812_v10 }
  0x9f   : > { %1128 = vmatprep.subr.bf16.mxu0 %v3038_v1 }
  0xa2   : > { %1129 = vmatpush1.bf16.msra.mxu0 %v2813_v11 }
  0xa3   : > { %1138 = vmatprep.subr.bf16.mxu0 %v3038_v1 }
  0xa6   : > { %1139 = vmatpush2.bf16.msra.mxu0 %v2814_v12 }
  0xa7   : > { %1140 = vmatprep.subr.bf16.mxu0 %v3038_v1 }
  0xaa   : > { %1141 = vmatpush2.bf16.msra.mxu0 %v2815_v13 }
  0xab   : > { %1142 = vmatprep.subr.bf16.mxu0 %v3038_v1 }
  0xae   : > { %1143 = vmatpush2.bf16.msra.mxu0 %v2816_v14 }
  0xaf   : > { %1144 = vmatprep.subr.bf16.mxu0 %v3038_v1 }
  0xb2   : > { %1145 = vmatpush2.bf16.msra.mxu0 %v2817_v15 }
  0xb5   : > { %1147 = vmatmul.mubr.bf16.vlgmr.msra.gmra.mxu0 %v1005_v16 }
 0x175   : > { %v1148_v18 = vpop.f32.mrf.mxu0 }
 0x176   : > { %v1149_v20 = vadd.f32 %v2480_v17, %v1148_v18 }
 0x177   : > { %v1150_v21 = vpop.f32.mrf.mxu0 }
 0x178   : > { %v1155_v22 = vadd.f32 %v1154_v19, %v1149_v20 }
 0x179   : > { %v1151_v23 = vpop.f32.mrf.mxu0 }
 0x17a   : > { %1157 = vst.msk [vmem:[#allocation2] sm:$0xf] %vm1156_vm1, %v1155_v22 }
 0x17b   : > { %v1152_v24 = vpop.f32.mrf.mxu0 }
 0x17c PF: > { %v2819_v25 = vld [vmem:[%s3335_s22 + $0x8] sm:$0xff]   ;;  %v3039_v26 = vmov 0.0   ;;  %v2821_v28 = vld [vmem:[%s3335_s22] sm:$0xff]   ;;  %vm3040_vm2 = vmmov 0   ;;  %vm1183_vm3 = vcmask 261120   ;;  %s3769_s17 = scalar_lea.vmem %s3669_s7, %s3320_s15  ;;  %s3770_s6 = sld [smem:[#allocation31_spill]] }
 0x17d   : > { %2593 = vmatprep.subr.bf16.mxu1 %v3039_v26  ;;  %2585 = vmatprep.subr.bf16.mxu0 %v3039_v26  ;;  %v2820_v27 = vld [vmem:[%s3330_s2 + $0x8] sm:$0xff]   ;;  %v2822_v29 = vld [vmem:[%s3330_s2] sm:$0xff]   ;;  %vm1356_vm4 = vcmask 64512   ;;  %s3041_s4 = smov 112   ;;  %s3042_s24 = smov 120   ;;  %vm1404_vm5 = vcmask 27648  }
 0x17e   : > { %2594 = vmatpush3.bf16.msra.mxu1 %v2819_v25  ;;  %2597 = vmatprep.mubr.msk.bf16.mxu1 %vm3040_vm2, %v3039_v26  ;;  %v2498_v32 = vld [vmem:[%s3769_s17] ss:$0 sm:$0xff]  ;;  %s3043_s29 = smov 104   ;;  %v2823_v47 = vld [vmem:[%s3344_s26 + $0x8] sm:$0xff]   ;;  %s3772_s5 = scalar_lea.vmem %s3671_s9, %s3320_s15  ;;  %vm1421_vm6 = vcmask 1041408   ;;  %vm1417_vm7 = vcmask 31744  }
 0x17f   : > { %2586 = vmatpush3.bf16.msra.mxu0 %v2820_v27  ;;  %2595 = vmatprep.subr.bf16.mxu1 %v3039_v26  ;;  %v2824_v48 = vld [vmem:[%s3344_s26] sm:$0xff]   ;;  %s3773_s8 = sld [smem:[#allocation25_spill]]  ;;  %s3044_s13 = smov 8   ;;  %vm1814_vm8 = vcmask 130048   ;;  %vm1816_vm9 = vcmask 195584   ;;  %vm1888_vm10 = vcmask 257024  }
 0x180   : > { %2587 = vmatprep.subr.bf16.mxu0 %v3039_v26  ;;  %2589 = vmatprep.mubr.msk.bf16.mxu0 %vm3040_vm2, %v3039_v26  ;;  %v2502_v0 = vld [vmem:[%s3772_s5] ss:$0 sm:$0xff]  ;;  %s3045_s14 = smov 16   ;;  %s3046_s19 = smov 24   ;;  %vm2025_vm11 = vcmask 523264  }
 0x181   : > { %v3443_v30 = vld [vmem:[#allocation2] sm:$0xf]  ;;  %s3774_s22 = sld [smem:[#allocation35_spill]]  ;;  %p2532_p7 = scmp.ne.s32.totalorder %s3017_s30, 1 }
 0x182   : > { %v1159_v31 = vpack.c.bf16 %v3443_v30, %v3443_v30  ;;  %2596 = vmatpush3.bf16.msra.mxu1 %v2821_v28  ;;  %s3771_s3 = scalar_lea.vmem %s3770_s6, %s3320_s15  ;;  %s3776_s16 = sld [smem:[#allocation36_spill]] }
 0x183   : > { %2588 = vmatpush3.bf16.msra.mxu0 %v2822_v29  ;;  %2609 = vmatprep.subr.bf16.mxu1 %v3039_v26  ;;  %v2494_v33 = vld [vmem:[%s3771_s3] ss:$0 sm:$0xff] }
 0x184   : > { %2601 = vmatprep.subr.bf16.mxu0 %v3039_v26 }
 0x185   : > { %2598 = vmatmul.mubr.msk.bf16.vlgmr.msra.gmra.mxu1 %vm1183_vm3, %v1159_v31 }
 0x186   : > { %2590 = vmatmul.mubr.msk.bf16.vlgmr.msra.gmra.mxu0 %vm1183_vm3, %v1159_v31  ;;  %2611 = vmatprep.mubr.msk.bf16.mxu1 %vm3040_vm2, %v3039_v26 }
 0x187   : > { %2605 = vmatprep.mubr.msk.bf16.mxu0 %vm3040_vm2, %v3039_v26  ;;  %2602 = vmatpush3.bf16.msra.mxu0 %v2823_v47  ;;  %s3775_s17 = scalar_lea.vmem %s3774_s22, %s3320_s15 }
 0x188   : > { %2603 = vmatprep.subr.bf16.mxu0 %v3039_v26  ;;  %s3777_s6 = scalar_lea.vmem %s3776_s16, %s3320_s15 }
 0x18b   : > { %2604 = vmatpush3.bf16.msra.mxu0 %v2824_v48 }
 0x18c   : > { %2615 = vmatprep.subr.bf16.mxu0 %v3039_v26 }
 0x18e   : > { %2606 = vmatmul.mubr.msk.bf16.vlgmr.msra.gmra.mxu0 %vm1183_vm3, %v1159_v31 }
 0x18f   : > { %2617 = vmatprep.mubr.msk.bf16.mxu0 %vm3040_vm2, %v3039_v26 }
 0x245   : > { %v1284_v34 = vpop.f32.mrf.mxu1 }
 0x246   : > { %v1285_v35 = vadd.f32 %v2498_v32, %v1284_v34  ;;  %v1221_v36 = vpop.f32.mrf.mxu0 }
 0x247   : > { %v1222_v37 = vadd.f32 %v2494_v33, %v1221_v36  ;;  %v2599_v38 = vpop.f32.mrf.mxu1 }
 0x248   : > { %v1354_v39 = vpack.c.bf16 %v1285_v35, %v1285_v35  ;;  %v2591_v40 = vpop.f32.mrf.mxu0 }
 0x249   : > { %v1287_v41 = vpop.f32.mrf.mxu1  ;;  %v1353_v42 = vpack.c.bf16 %v1222_v37, %v1222_v37 }
 0x24a   : > { %1581 = vrot.lane.b32.xlu1 %v1354_v39, %s3041_s4  ;;  %1469 = vrot.lane.b32.xlu0 %v1354_v39, %s3042_s24  ;;  %v1224_v43 = vpop.f32.mrf.mxu0  ;;  %v1361_v44 = vsel %vm1356_vm4, %v1354_v39, 0 }
 0x24b   : > { %v2600_v45 = vpop.f32.mrf.mxu1  ;;  %2610 = vmatpush3.bf16.xpose.msra.mxu1 %v1361_v44 }
 0x24c   : > { %v2592_v46 = vpop.f32.mrf.mxu0  ;;  %2621 = vmatprep.subr.bf16.mxu1 %v3039_v26 }
 0x24e   : > { %1579 = vrot.lane.b32.xlu1 %v1353_v42, %s3041_s4  ;;  %1466 = vrot.lane.b32.xlu0 %v1353_v42, %s3042_s24  ;;  %v1347_v1 = vpop.f32.mrf.mxu0 }
 0x24f   : > { %v1348_v2 = vadd.f32 %v2502_v0, %v1347_v1 }
 0x250   : > { %v2607_v3 = vpop.f32.mrf.mxu0 }
 0x251   : > { %v1355_v4 = vpack.c.bf16 %v1348_v2, %v1348_v2 }
 0x252   : > { %1690 = vrot.lane.b32.xlu1 %v1353_v42, %s3043_s29  ;;  %1692 = vrot.lane.b32.xlu0 %v1354_v39, %s3043_s29  ;;  %v1350_v5 = vpop.f32.mrf.mxu0 }
 0x253   : > { %2612 = vmatmul.mubr.msk.bf16.vlgmr.msra.gmra.mxu1 %vm1356_vm4, %v1353_v42  ;;  %v1423_v6 = vsel %vm1421_vm6, %v1355_v4, 0 }
 0x254   : > { %2623 = vmatprep.mubr.msk.bf16.mxu1 %vm3040_vm2, %v3039_v26  ;;  %v2608_v7 = vpop.f32.mrf.mxu0  ;;  %2616 = vmatpush3.bf16.msra.mxu0 %v1423_v6 }
 0x255   : > { %2627 = vmatprep.subr.bf16.mxu0 %v3039_v26 }
 0x2bc   : > { %v1470_v49 = vpop.permute.xlu0 %1469  ;;  %v1582_v51 = vpop.permute.xlu1 %1581 }
 0x2bd   : > { %v1475_v50 = vsel %vm1356_vm4, %v1470_v49, 0  ;;  %v1587_v53 = vsel %vm1356_vm4, %v1582_v51, 0 }
 0x2be   : > { %2622 = vmatpush3.bf16.xpose.msra.mxu1 %v1475_v50 }
 0x2bf   : > { %2633 = vmatprep.subr.bf16.mxu1 %v3039_v26 }
 0x2c0   : > { %v1467_v52 = vpop.permute.xlu0 %1466  ;;  %v1580_v55 = vpop.permute.xlu1 %1579 }
 0x2c4   : > { %v1693_v54 = vpop.permute.xlu0 %1692  ;;  %v1691_v57 = vpop.permute.xlu1 %1690 }
 0x2c5   : > { %2624 = vmatmul.mubr.msk.bf16.vlgmr.msra.gmra.mxu1 %vm1356_vm4, %v1467_v52  ;;  %v1698_v56 = vsel %vm1356_vm4, %v1693_v54, 0 }
 0x2c6   : > { %2634 = vmatpush3.bf16.xpose.msra.mxu1 %v1587_v53  ;;  %2635 = vmatprep.mubr.msk.bf16.mxu1 %vm3040_vm2, %v3039_v26 }
 0x2c7   : > { %2645 = vmatprep.subr.bf16.mxu1 %v3039_v26 }
 0x2cd   : > { %2636 = vmatmul.mubr.msk.bf16.vlgmr.msra.gmra.mxu1 %vm1356_vm4, %v1580_v55 }
 0x2ce   : > { %2646 = vmatpush3.bf16.xpose.msra.mxu1 %v1698_v56  ;;  %2647 = vmatprep.mubr.msk.bf16.mxu1 %vm3040_vm2, %v3039_v26 }
 0x2cf   : > { %2657 = vmatprep.subr.bf16.mxu1 %v3039_v26 }
 0x2d5   : > { %2648 = vmatmul.mubr.msk.bf16.vlgmr.msra.gmra.mxu1 %vm1356_vm4, %v1691_v57 }
 0x2d6   : > { %2661 = vmatprep.mubr.msk.bf16.mxu1 %vm3040_vm2, %v3039_v26 }
 0x313   : > { %v1397_v58 = vpop.f32.mrf.mxu1 }
 0x314   : > { %v1403_v59 = vmul.f32 0.35355338, %v1397_v58 }
 0x315   : > { %v2613_v60 = vpop.f32.mrf.mxu1 }
 0x316   : > { %v1405_v61 = vsel %vm1404_vm5, %v1403_v59, -inf }
 0x317   : > { %1406 = vmax.xlane.f32.xlu0 %v1405_v61  ;;  %v1400_v62 = vpop.f32.mrf.mxu1 }
 0x319   : > { %v2614_v63 = vpop.f32.mrf.mxu1 }
 0x385   : > { %v1511_v8 = vpop.f32.mrf.mxu1 }
 0x386   : > { %v1517_v9 = vmul.f32 0.35355338, %v1511_v8 }
 0x387   : > { %v2625_v10 = vpop.f32.mrf.mxu1 }
 0x388   : > { %v1518_v11 = vsel %vm1404_vm5, %v1517_v9, -inf  ;;  %v2825_v10 = vld [vmem:[%s3773_s8 + $0x8] sm:$0xff]  }
 0x389   : > { %1519 = vmax.xlane.f32.xlu1 %v1518_v11  ;;  %v1514_v12 = vpop.f32.mrf.mxu1  ;;  %2658 = vmatpush3.bf16.msra.mxu1 %v2825_v10 }
 0x38a   : > { %2659 = vmatprep.subr.bf16.mxu1 %v3039_v26 }
 0x38b   : > { %v2626_v13 = vpop.f32.mrf.mxu1 }
 0x38c   : > { %v2826_v13 = vld [vmem:[%s3773_s8] sm:$0xff]  }
 0x38d   : > { %v1623_v14 = vpop.f32.mrf.mxu1  ;;  %2660 = vmatpush3.bf16.msra.mxu1 %v2826_v13 }
 0x38e   : > { %v1629_v15 = vmul.f32 0.35355338, %v1623_v14  ;;  %2673 = vmatprep.subr.bf16.mxu1 %v3039_v26 }
 0x38f   : > { %v2637_v16 = vpop.f32.mrf.mxu1 }
 0x390   : > { %v1630_v17 = vsel %vm1404_vm5, %v1629_v15, -inf }
 0x391   : > { %1631 = vmax.xlane.f32.xlu0 %v1630_v17  ;;  %v1626_v18 = vpop.f32.mrf.mxu1 }
 0x393   : > { %v2638_v19 = vpop.f32.mrf.mxu1 }
 0x395   : > { %v1734_v20 = vpop.f32.mrf.mxu1 }
 0x396   : > { %v1740_v21 = vmul.f32 0.35355338, %v1734_v20 }
 0x397   : > { %v2649_v22 = vpop.f32.mrf.mxu1 }
 0x398   : > { %v1741_v23 = vsel %vm1404_vm5, %v1740_v21, -inf }
 0x399   : > { %1742 = vmax.xlane.f32.xlu0 %v1741_v23  ;;  %v1737_v24 = vpop.f32.mrf.mxu1 }
 0x39b   : > { %v2650_v25 = vpop.f32.mrf.mxu1 }
 0x3a0   : > { %v1407_v27 = vpop.xlane.xlu0 %1406 }
 0x3a1   : > { %v1408_v28 = vsub.f32 %v1403_v59, %v1407_v27 }
 0x3a3   : > { %v1409_v29 = vmul.f32 1.442695, %v1408_v28 }
 0x3a5   : > { %2833 = vpow2.f32 %v1409_v29 }
 0x3b2   : > { %v2834_v31 = vpop.eup %2833 }
 0x3b3   : > { %v1411_v32 = vsel %vm1404_vm5, %v2834_v31, 0.0 }
 0x3b4   : > { %1412 = vadd.xlane.f32.xlu1 %v1411_v32 }
 0x3c5   : > { %1531 = vrot.lane.b32.xlu1 %v1355_v4, %s3042_s24  ;;  %s3778_s24 = sld [smem:[#allocation37_spill]] }
 0x412   : > { %v1520_v33 = vpop.xlane.xlu1 %1519 }
 0x413   : > { %v1521_v34 = vsub.f32 %v1517_v9, %v1520_v33  ;;  %v2514_v33 = vld [vmem:[%s3775_s17] ss:$0 sm:$0xff] }
 0x415   : > { %v1522_v35 = vmul.f32 1.442695, %v1521_v34 }
 0x417   : > { %2835 = vpow2.f32 %v1522_v35 }
 0x41a   : > { %v1632_v36 = vpop.xlane.xlu0 %1631 }
 0x41b   : > { %v1633_v37 = vsub.f32 %v1629_v15, %v1632_v36 }
 0x41d   : > { %v1634_v38 = vmul.f32 1.442695, %v1633_v37 }
 0x41f   : > { %2837 = vpow2.f32 %v1634_v38 }
 0x422   : > { %v1743_v39 = vpop.xlane.xlu0 %1742 }
 0x423   : > { %v1744_v40 = vsub.f32 %v1740_v21, %v1743_v39 }
 0x424   : > { %v2836_v41 = vpop.eup %2835 }
 0x425   : > { %v1745_v42 = vmul.f32 1.442695, %v1744_v40  ;;  %v1524_v43 = vsel %vm1404_vm5, %v2836_v41, 0.0 }
 0x426   : > { %1525 = vadd.xlane.f32.xlu0 %v1524_v43 }
 0x427   : > { %2839 = vpow2.f32 %v1745_v42 }
 0x42c   : > { %v2838_v44 = vpop.eup %2837 }
 0x42d   : > { %v1636_v45 = vsel %vm1404_vm5, %v2838_v44, 0.0 }
 0x42e   : > { %1637 = vadd.xlane.f32.xlu1 %v1636_v45 }
 0x434   : > { %v2840_v46 = vpop.eup %2839 }
 0x435   : > { %v1747_v47 = vsel %vm1404_vm5, %v2840_v46, 0.0 }
 0x436   : > { %1748 = vadd.xlane.f32.xlu0 %v1747_v47  ;;  %v2828_v47 = vld [vmem:[%s3370_s20] sm:$0xff]  }
 0x43d   : > { %v1413_v48 = vpop.xlane.xlu1 %1412 }
 0x43e   : > { %2841 = vrcp.f32 %v1413_v48  ;;  %v2830_v48 = vld [vmem:[%s3380_s11 + $0x10] sm:$0xff]  }
 0x43f   : > { %1753 = vrot.lane.b32.xlu1 %v1355_v4, %s3043_s29  ;;  %s3779_s29 = scalar_lea.vmem %s3778_s24, %s3320_s15 }
 0x441   : > { %v1532_v50 = vpop.permute.xlu1 %1531 }
 0x442   : > { %v1537_v53 = vsel %vm1421_vm6, %v1532_v50, 0 }
 0x44b   : > { %v2842_v49 = vpop.eup %2841 }
 0x44c   : > { %1642 = vrot.lane.b32.xlu0 %v1355_v4, %s3041_s4  ;;  %v1415_v51 = vmul.f32 %v2842_v49, %v2834_v31  ;;  %s3785_s4 = sld [smem:[#allocation45_spill]] (!%p2532_p7) }
 0x44e   : > { %v1416_v52 = vpack.c.bf16 %v1415_v51, %v1415_v51 }
 0x450   : > { %2618 = vmatmul.mubr.msk.bf16.vlgmr.msra.gmra.mxu0 %vm1417_vm7, %v1416_v52 }
 0x451   : > { %2628 = vmatpush3.bf16.msra.mxu0 %v1537_v53  ;;  %2629 = vmatprep.mubr.msk.bf16.mxu0 %vm3040_vm2, %v3039_v26  ;;  %v2518_v53 = vld [vmem:[%s3777_s6] ss:$0 sm:$0xff] }
 0x452   : > { %2639 = vmatprep.subr.bf16.mxu0 %v3039_v26 }
 0x4af   : > { %v1526_v54 = vpop.xlane.xlu0 %1525 }
 0x4b0   : > { %2843 = vrcp.f32 %v1526_v54 }
 0x4b7   : > { %v1638_v55 = vpop.xlane.xlu1 %1637 }
 0x4b8   : > { %2845 = vrcp.f32 %v1638_v55  ;;  %v2519_v55 = vld [vmem:[%s3779_s29] ss:$0 sm:$0xff] }
 0x4bb   : > { %v1754_v0 = vpop.permute.xlu1 %1753 }
 0x4bc   : > { %v1759_v2 = vsel %vm1421_vm6, %v1754_v0, 0 }
 0x4bd   : > { %v2844_v56 = vpop.eup %2843 }
 0x4be   : > { %v1528_v57 = vmul.f32 %v2844_v56, %v2836_v41 }
 0x4bf   : > { %v1749_v58 = vpop.xlane.xlu0 %1748 }
 0x4c0   : > { %2847 = vrcp.f32 %v1749_v58  ;;  %v1529_v59 = vpack.c.bf16 %v1528_v57, %v1528_v57 }
 0x4c2   : > { %2630 = vmatmul.mubr.msk.bf16.vlgmr.msra.gmra.mxu0 %vm1417_vm7, %v1529_v59  ;;  %v2831_v59 = vld [vmem:[%s3380_s11 + $0x8] sm:$0xff]  }
 0x4c3   : > { %v1643_v60 = vpop.permute.xlu0 %1642  ;;  %2641 = vmatprep.mubr.msk.bf16.mxu0 %vm3040_vm2, %v3039_v26 }
 0x4c4   : > { %v1648_v61 = vsel %vm1421_vm6, %v1643_v60, 0  ;;  %v2832_v60 = vld [vmem:[%s3380_s11] sm:$0xff]  }
 0x4c5   : > { %v2846_v62 = vpop.eup %2845  ;;  %2640 = vmatpush3.bf16.msra.mxu0 %v1648_v61  ;;  %v2520_v61 = vld [vmem:[%s981_s10] ss:$0 sm:$0xff] }
 0x4c6   : > { %2651 = vmatprep.subr.bf16.mxu0 %v3039_v26  ;;  %v1640_v63 = vmul.f32 %v2846_v62, %v2838_v44 }
 0x4c8   : > { %v1641_v1 = vpack.c.bf16 %v1640_v63, %v1640_v63 }
 0x4ca   : > { %2642 = vmatmul.mubr.msk.bf16.vlgmr.msra.gmra.mxu0 %vm1417_vm7, %v1641_v1 }
 0x4cb   : > { %2652 = vmatpush3.bf16.msra.mxu0 %v1759_v2  ;;  %2653 = vmatprep.mubr.msk.bf16.mxu0 %vm3040_vm2, %v3039_v26 }
 0x4cc   : > { %2665 = vmatprep.subr.bf16.mxu0 %v3039_v26 }
 0x4cd   : > { %v2848_v3 = vpop.eup %2847 }
 0x4ce   : > { %v1751_v4 = vmul.f32 %v2848_v3, %v2840_v46  ;;  %v2827_v46 = vld [vmem:[%s3370_s20 + $0x8] sm:$0xff]   ;;  %s3784_s20 = sld [smem:[#allocation44_spill]] (!%p2532_p7) }
 0x4d0   : > { %v1752_v5 = vpack.c.bf16 %v1751_v4, %v1751_v4 }
 0x4d2   : > { %2654 = vmatmul.mubr.msk.bf16.vlgmr.msra.gmra.mxu0 %vm1417_vm7, %v1752_v5 }
 0x4d3   : > { %2669 = vmatprep.mubr.msk.bf16.mxu0 %vm3040_vm2, %v3039_v26  ;;  %2666 = vmatpush3.bf16.msra.mxu0 %v2827_v46 }
 0x4d4   : > { %2667 = vmatprep.subr.bf16.mxu0 %v3039_v26 }
 0x4d7   : > { %2668 = vmatpush3.bf16.msra.mxu0 %v2828_v47 }
 0x510   : > { %v1459_v6 = vpop.f32.mrf.mxu0 }
 0x512   : > { %v2619_v7 = vpop.f32.mrf.mxu0 }
 0x514   : > { %v1462_v8 = vpop.f32.mrf.mxu0 }
 0x516   : > { %v2620_v9 = vpop.f32.mrf.mxu0 }
 0x582   : > { %v1573_v11 = vpop.f32.mrf.mxu0 }
 0x583   : > { %1802 = vrot.lane.b32.xlu1 %v1573_v11, %s3044_s13 }
 0x584   : > { %v2631_v12 = vpop.f32.mrf.mxu0 }
 0x586   : > { %v1576_v14 = vpop.f32.mrf.mxu0 }
 0x588   : > { %v2632_v15 = vpop.f32.mrf.mxu0 }
 0x58a   : > { %v1684_v16 = vpop.f32.mrf.mxu0 }
 0x58b   : > { %1806 = vrot.lane.b32.xlu0 %v1684_v16, %s3045_s14 }
 0x58c   : > { %v2643_v17 = vpop.f32.mrf.mxu0 }
 0x58e   : > { %v1687_v18 = vpop.f32.mrf.mxu0 }
 0x590   : > { %v2644_v19 = vpop.f32.mrf.mxu0 }
 0x592   : > { %v1795_v20 = vpop.f32.mrf.mxu0 }
 0x593   : > { %1810 = vrot.lane.b32.xlu1 %v1795_v20, %s3046_s19 }
 0x594   : > { %v2655_v21 = vpop.f32.mrf.mxu0 }
 0x595   : > { %v2530_v21 = vld [vmem:[%s992_s28] ss:$0 sm:$0xff] }
 0x596   : > { %v1798_v22 = vpop.f32.mrf.mxu0 }
 0x598   : > { %v2656_v23 = vpop.f32.mrf.mxu0 }
 0x599   : > { %v2531_v23 = vld [vmem:[%s995_s12] ss:$0 sm:$0xff] }
 0x5f5   : > { %v1803_v24 = vpop.permute.xlu1 %1802 }
 0x5f6   : > { %v1813_v27 = vsel %vm1356_vm4, %v1459_v6, %v1803_v24 }
 0x5fd   : > { %v1807_v25 = vpop.permute.xlu0 %1806 }
 0x5fe   : > { %v1815_v28 = vsel %vm1814_vm8, %v1813_v27, %v1807_v25 }
 0x605   : > { %v1811_v29 = vpop.permute.xlu1 %1810 }
 0x606   : > { %v1817_v31 = vsel %vm1816_vm9, %v1815_v28, %v1811_v29 }
 0x607   : > { %v1818_v32 = vpack.c.bf16 %v1817_v31, %v1817_v31 }
 0x609   : > { %2662 = vmatmul.mubr.msk.bf16.vlgmr.msra.gmra.mxu1 %vm1183_vm3, %v1818_v32 }
 0x60a   : > { %2681 = vmatprep.mubr.msk.bf16.mxu1 %vm3040_vm2, %v3039_v26 }
 0x6c9   : > { %v1879_v34 = vpop.f32.mrf.mxu1 }
 0x6ca   : > { %v1880_v35 = vadd.f32 %v2514_v33, %v1879_v34 }
 0x6cb   : > { %v2663_v36 = vpop.f32.mrf.mxu1 }
 0x6cc   : > { %v1885_v37 = vadd.f32 %v1880_v35, %v3443_v30  ;;  %v2829_v30 = vld [vmem:[%s3380_s11 + $0x18] sm:$0xff]  }
 0x6cd   : > { %v1882_v38 = vpop.f32.mrf.mxu1  ;;  %2674 = vmatpush3.bf16.msra.mxu1 %v2829_v30 }
 0x6ce   : > { %v1889_v39 = vsel %vm1888_vm10, %v1885_v37, 0.0  ;;  %2675 = vmatprep.subr.bf16.mxu1 %v3039_v26 }
 0x6cf   : > { %1890 = vadd.xlane.f32.xlu0 %v1889_v39  ;;  %v2664_v40 = vpop.f32.mrf.mxu1 }
 0x6d1   : > { %2676 = vmatpush3.bf16.msra.mxu1 %v2830_v48 }
 0x6d2   : > { %2677 = vmatprep.subr.bf16.mxu1 %v3039_v26 }
 0x6d5   : > { %2678 = vmatpush3.bf16.msra.mxu1 %v2831_v59 }
 0x6d6   : > { %2679 = vmatprep.subr.bf16.mxu1 %v3039_v26  ;;  %v2524_v26 = vld [vmem:[%s989_s1] ss:$0 sm:$0xff] }
 0x6d9   : > { %2680 = vmatpush3.bf16.msra.mxu1 %v2832_v60 }
 0x758   : > { %v1891_v41 = vpop.xlane.xlu0 %1890 }
 0x759   : > { %v1893_v42 = vmul.f32 0.03125, %v1891_v41 }
 0x75b   : > { %v1894_v43 = vsub.f32 %v1885_v37, %v1893_v42 }
 0x75d   : > { %v1895_v44 = vmul.f32 %v1894_v43, %v1894_v43 }
 0x75f   : > { %v1896_v45 = vsel %vm1888_vm10, %v1895_v44, 0.0 }
 0x760   : > { %1897 = vadd.xlane.f32.xlu1 %v1896_v45 }
 0x7e9   : > { %v1898_v49 = vpop.xlane.xlu1 %1897 }
 0x7ea   : > { %v1899_v50 = vmul.f32 0.03125, %v1898_v49 }
 0x7ec   : > { %v1900_v51 = vadd.f32 1e-05, %v1899_v50 }
 0x7ee   : > { %2849 = vrsqrt.f32 %v1900_v51 }
 0x7fb   : > { %v2850_v52 = vpop.eup %2849 }
 0x7fc   : > { %v1902_v54 = vmul.f32 %v2850_v52, %v1894_v43 }
 0x7fe   : > { %v1909_v56 = vmul.f32 %v2518_v53, %v1902_v54 }
 0x800   : > { %v1916_v57 = vadd.f32 %v2519_v55, %v1909_v56 }
 0x802   : > { %v1917_v58 = vpack.c.bf16 %v1916_v57, %v1916_v57 }
 0x804   : > { %2670 = vmatmul.mubr.msk.bf16.vlgmr.msra.gmra.mxu0 %vm1183_vm3, %v1917_v58 }
 0x8c4   : > { %v1978_v62 = vpop.f32.mrf.mxu0 }
 0x8c5   : > { %v1979_v63 = vadd.f32 %v2520_v61, %v1978_v62 }
 0x8c6   : > { %v2671_v0 = vpop.f32.mrf.mxu0 }
 0x8c7   : > { %v1984_v1 = vmax.f32 %v1979_v63, 0.0 }
 0x8c8   : > { %v1981_v2 = vpop.f32.mrf.mxu0 }
 0x8c9   : > { %v1985_v3 = vpack.c.bf16 %v1984_v1, %v1984_v1 }
 0x8ca   : > { %v2672_v4 = vpop.f32.mrf.mxu0 }
 0x8cb   : > { %2682 = vmatmul.mubr.msk.bf16.vlgmr.msra.gmra.mxu1 %vm2025_vm11, %v1985_v3 }
 0x98b   : > { %v2063_v5 = vpop.f32.mrf.mxu1 }
 0x98c   : > { %v2064_v6 = vadd.f32 %v2524_v26, %v2063_v5 }
 0x98d   : > { %v2683_v7 = vpop.f32.mrf.mxu1 }
 0x98e   : > { %v2069_v8 = vadd.f32 %v2064_v6, %v1916_v57 }
 0x98f   : > { %v2066_v9 = vpop.f32.mrf.mxu1 }
 0x990   : > { %v2072_v10 = vsel %vm1888_vm10, %v2069_v8, 0.0 }
 0x991   : > { %2073 = vadd.xlane.f32.xlu0 %v2072_v10  ;;  %v2684_v11 = vpop.f32.mrf.mxu1 }
 0xa1a   : > { %v2074_v12 = vpop.xlane.xlu0 %2073 }
 0xa1b   : > { %v2075_v13 = vmul.f32 0.03125, %v2074_v12 }
 0xa1d   : > { %v2076_v14 = vsub.f32 %v2069_v8, %v2075_v13 }
 0xa1f   : > { %v2077_v15 = vmul.f32 %v2076_v14, %v2076_v14 }
 0xa21   : > { %v2078_v16 = vsel %vm1888_vm10, %v2077_v15, 0.0 }
 0xa22   : > { %2079 = vadd.xlane.f32.xlu0 %v2078_v16 }
 0xaab   : > { %v2080_v17 = vpop.xlane.xlu0 %2079 }
 0xaac   : > { %v2081_v18 = vmul.f32 0.03125, %v2080_v17 }
 0xaae   : > { %v2082_v19 = vadd.f32 1e-05, %v2081_v18 }
 0xab0   : > { %2851 = vrsqrt.f32 %v2082_v19 }
 0xabd   : > { %v2852_v20 = vpop.eup %2851 }
 0xabe   : > { %v2084_v22 = vmul.f32 %v2852_v20, %v2076_v14 }
 0xac0   : > { %v2091_v24 = vmul.f32 %v2530_v21, %v2084_v22  ;;  %2103 = sbr.rel (%p2532_p7) target bundleno = 2962 (0xb92), region = 128 }
 0xac2   : > { %v2098_v25 = vadd.f32 %v2531_v23, %v2091_v24 }
 0xac4   : > { %2099 = vst.msk [vmem:[#allocation2] sm:$0xf] %vm1888_vm10, %v2098_v25 }
 0xac5   : > { %v2107_v27 = vld [vmem:[%s3784_s20 + $0x18] sm:$0xff]  ;;  %v3047_v28 = vmov 0.0   ;;  %v2106_v29 = vld [vmem:[%s3784_s20 + $0x10] sm:$0xff]  ;;  %vm3048_vm12 = vmmov 0   ;;  %v2105_v31 = vld [vmem:[%s3784_s20 + $0x8] sm:$0xff] }
 0xac6   : > { %2685 = vmatprep.subr.mxu0 %v3047_v28  ;;  %2693 = vmatprep.mubr.msk.f32.mxu0 %vm3048_vm12, %v3047_v28  ;;  %v2104_v32 = vld [vmem:[%s3784_s20] sm:$0xff] }
 0xac7   : > { %2686 = vmatpush3.msra.mxu0 %v2107_v27  ;;  %v2108_v33 = vld [vmem:[%s3785_s4] sm:$0x1] }
 0xac8   : > { %2687 = vmatprep.subr.mxu0 %v3047_v28 }
 0xac9   : > { %2688 = vmatpush3.msra.mxu0 %v2106_v29 }
 0xaca   : > { %2689 = vmatprep.subr.mxu0 %v3047_v28 }
 0xacb   : > { %2690 = vmatpush3.msra.mxu0 %v2105_v31 }
 0xacc   : > { %2691 = vmatprep.subr.mxu0 %v3047_v28 }
 0xacd   : > { %2692 = vmatpush3.msra.mxu0 %v2104_v32 }
 0xace   : > { %2694 = vmatmul.mubr.msk.f32.vlgmr.msra.gmra.mxu0 %vm1183_vm3, %v2098_v25 }
 0xb8e   : > { %v2178_v34 = vpop.f32.mrf.mxu0 }
 0xb8f   : > { %v2179_v35 = vadd.f32 %v2178_v34, %v2108_v33 }
 0xb90   : > { %v2695_v36 = vpop.f32.mrf.mxu0 }
 0xb91   : > { %2182 = vst [vmem:[%s935_s27] sm:$0x1] %v2179_v35 }
 0xb92 PF: > { %s3786_s24 = sld [smem:[#allocation16_spill]]  ;;  %s2196_s14 = sshll.u32 %s935_s27, 4  ;;  %s2197_s14 = int_to_ptr.vmem [resolvable:$true] %s2196_s14 }
 0xb93   : > { %s3788_s8 = sld [smem:[#allocation46_spill]]  ;;  %s2184_s10 = scalar_lea.sflag [#allocation5], %s3304_s21 }
 0xb94   : > { %s2933_s11 = scalar_lea.vmem %s2197_s14, 16  ;;  %s3049_s1 = smov [#allocation9]  }
 0xb95   : > { %p2934_p9 = scmp.ne.s32.totalorder %s2197_s14, %s2933_s11  ;;  %s2937_s19 = sshll.u32 %s3049_s1, 4  ;;  %s2938_s19 = int_to_ptr.vmem [resolvable:$false] %s2937_s19 }
 0xb96   : > { %s2939_s18 = scalar_lea.vmem %s2938_s19, 32  ;;  %p2940_p3 = scmp.lt.s32.totalorder %s2197_s14, %s2938_s19 }
 0xb97   : > { %p2935_p12 = pnand %p2934_p9, %p3274_p11  ;;  %p2941_p1 = scmp.lt.s32.totalorder %s2939_s18, %s2933_s11 }
 0xb98   : > { %s2534_s26 = sshll.u32 %s3786_s24, 4 }
 0xb99   : > { %s2194_s13 = scalar_lea.hbm %s3788_s8, %s2534_s26  ;;  %p2936_p13 = pneg %p2935_p12 }
 0xb9a   : > { %p2942_p4 = por %p2941_p1, %p2940_p3 }
 0xb9c   : > { %p2943_p6 = pnand %p2942_p4, %p2936_p13 }
 0xb9e   : > { %2946 = shalt.err (!%p2943_p6)
}
 0xb9f   : > { %s2947_s2 = scalar_lea.hbm %s2194_s13, 16  ;;  %s2951_s22 = scalar_lea.hbm %s3788_s8, 32 }
 0xba0   : > { %p2948_p8 = scmp.ne.s32.totalorder %s2194_s13, %s2947_s2  ;;  %p2952_p5 = scmp.lt.s32.totalorder %s2194_s13, %s3788_s8 }
 0xba1   : > { %p2953_p2 = scmp.lt.s32.totalorder %s2951_s22, %s2947_s2 }
 0xba2   : > { %p2949_p10 = pnand %p2948_p8, %p3274_p11 }
 0xba3   : > { %p2954_p7 = por %p2953_p2, %p2952_p5 }
 0xba4   : > { %p2950_p0 = pneg %p2949_p10 }
 0xba6   : > { %p2955_p9 = pnand %p2954_p7, %p2950_p0 }
 0xba8   : > { %2958 = shalt.err (!%p2955_p9)
}
 0xba9   : > { %2706 = dma.vmem_to_hbm [thread:$0]  (%p3274_p11), %s2197_s14, 16, %s2194_s13, %s2184_s10  }
 0xbaa PF: > { %s3789_s0 = sld [smem:[#allocation19_spill]] }
 0xbab   : > { %s3790_s12 = sld [smem:[#allocation13_spill]] }
 0xbac   : > { %s3791_s15 = sld [smem:[#allocation20_spill]] }
 0xbb0   : > { %p2728_p12 = scmp.ge.s32.totalorder %s3789_s0, 2 }
 0xbb1   : > { %s2208_s30 = sand.u32 1, %s3790_s12  }
 0xbb2   : > { %p3792_p13 = scmp.ne.s32.totalorder %s3791_s15, 0  ;;  %s2209_s16 = scalar_lea.sflag [#allocation5], %s2208_s30 }
 0xbb4   : > { %p2720_p3 = pnand %p2728_p12, %p3792_p13 }
 0xbb6   : > { %p2721_p1 = pneg %p2720_p3 }
 0xbb8   : > { %3000 = dma.done.wait (%p2721_p1), %s2209_s16, 16  }
 0xbb9   : > { %3002 = vsyncadd (%p2721_p1), %s2209_s16, 4294967280  ;;  %s39_s1 = sadd.s32 1, %s3789_s0   ;;  %s3793_s3 = sld [smem:[#allocation14_spill]] }
 0xbba   : > { %p36_p4 = scmp.ge.s32.totalorder %s39_s1, 6   ;;  %s3794_s28 = sld [smem:[#allocation15_spill]] }
 0xbbb   : > { %s3795_s29 = sld [smem:[#allocation24_spill]] }
 0xbbc   : > { %s3796_s30 = sld [smem:[#allocation17_spill]]  ;;  %38 = sbr.rel (!%p36_p4) target bundleno = 30 (0x1e), region = 217 }
 0xbbd   : > { %s3797_s4 = sld [smem:[#allocation18_spill]] }
 0xbbe   : > { %s3798_s0 = sld [smem:[#allocation21_spill]] }
 0xbbf   : > { %s3799_s23 = sld [smem:[#allocation23_spill]] }
 0xbc1   :  { %2213 = vsyncpa [#allocation4], 1 }
 0xbc2   :  { %2215 = vsyncpa [#allocation4 + $0x1], 1 }
 0xbc3   :  { %2216 = vsyncpa [#allocation7], 1 }
 0xbc4   :  { %2217 = vsyncpa [#allocation5], 1 }
 0xbc5   :  { %2219 = vsyncpa [#allocation5 + $0x1], 1 }

</bundles_post_ra>
